<compile_context>
chip_gen: v7x
topology: tpu7x:2x2x1
jax: 0.10.0
libtpu: 0.0.40
codegen_flags: <defaults>
</compile_context>

<pallas_src>
import jax
import jax.numpy as jnp
from jax.experimental import pallas as pl
from jax.experimental.pallas import tpu as pltpu

_WIN = 11              # SSIM avg-pool window size
_PAD = _WIN // 2       # = 5; also covers the Sobel halo of 1
_C1 = 0.01 ** 2
_C2 = 0.03 ** 2
_LAMBDA_SSIM = 0.85
_LAMBDA_GRAD = 0.15

# Fixed (non-trainable) Sobel filters of GradientMatchingLoss; used directly
# only by the pure-JAX reference -- the kernel uses their separable form.
SOBEL_X = ((-1.0, 0.0, 1.0),
           (-2.0, 0.0, 2.0),
           (-1.0, 0.0, 1.0))
SOBEL_Y = ((-1.0, -2.0, -1.0),
           ( 0.0,  0.0,  0.0),
           ( 1.0,  2.0,  1.0))


def combined_loss_kernel(p_ref, t_ref, ssim_ref, gx_ref, gy_ref,
                         ppad_ref, tpad_ref):
    # p_ref / t_ref : (1, H, W) f32 block -- one image per grid step.
    # ssim_ref/gx_ref/gy_ref : (1, 1, 1) f32 per-image partial sums.
    # ppad_ref/tpad_ref : (H+2*_PAD, W+2*_PAD) f32 VMEM scratch.
    _, h, w = p_ref.shape
    pad = _PAD

    p = p_ref[0]                      # (h, w)
    t = t_ref[0]

    # In-kernel zero padding: no second (padded) copy of the inputs in HBM.
    ppad_ref[...] = jnp.zeros_like(ppad_ref)
    tpad_ref[...] = jnp.zeros_like(tpad_ref)
    ppad_ref[pad:pad + h, pad:pad + w] = p
    tpad_ref[pad:pad + h, pad:pad + w] = t
    ppad = ppad_ref[...]
    tpad = tpad_ref[...]

    # ------------- SSIM: 11x11 avg pool, count_include_pad=True ------------
    def box_sum(xpad):
        # Separable 11x11 box sum over the zero-padded image -> (h, w).
        rows = xpad[0:h, :]
        for dy in range(1, _WIN):
            rows = rows + xpad[dy:dy + h, :]          # vertical (sublane) pass
        out = rows[:, 0:w]
        for dx in range(1, _WIN):
            out = out + rows[:, dx:dx + w]            # horizontal (lane) pass
        return out

    inv_win = 1.0 / float(_WIN * _WIN)
    mu_p = box_sum(ppad) * inv_win
    mu_t = box_sum(tpad) * inv_win
    # Zero padding is preserved by squaring / multiplying, so the padded
    # second-moment inputs come for free from ppad / tpad.
    e_pp = box_sum(ppad * ppad) * inv_win
    e_tt = box_sum(tpad * tpad) * inv_win
    e_pt = box_sum(ppad * tpad) * inv_win

    sigma_p = e_pp - mu_p * mu_p
    sigma_t = e_tt - mu_t * mu_t
    sigma_pt = e_pt - mu_p * mu_t

    num = (2.0 * mu_p * mu_t + _C1) * (2.0 * sigma_pt + _C2)
    den = (mu_p * mu_p + mu_t * mu_t + _C1) * (sigma_p + sigma_t + _C2)
    ssim_sum = jnp.sum(num / den)

    # --------- Gradient matching: Sobel on d = p - t (conv linearity) ------
    lo = pad - 1   # reuse the SSIM padding to get d with a 1-pixel zero halo
    dpad = (ppad[lo:lo + h + 2, lo:lo + w + 2]
            - tpad[lo:lo + h + 2, lo:lo + w + 2])                  # (h+2, w+2)
    # Separable Sobel with a shared vertical pass: 2 lane shifts per filter.
    v_s = dpad[0:h, :] + 2.0 * dpad[1:h + 1, :] + dpad[2:h + 2, :]  # (h, w+2)
    v_d = dpad[2:h + 2, :] - dpad[0:h, :]                           # (h, w+2)
    grad_x = v_s[:, 2:w + 2] - v_s[:, 0:w]
    grad_y = v_d[:, 0:w] + 2.0 * v_d[:, 1:w + 1] + v_d[:, 2:w + 2]
    gx_sum = jnp.sum(jnp.abs(grad_x))
    gy_sum = jnp.sum(jnp.abs(grad_y))

    ssim_ref[...] = jnp.full((1, 1, 1), ssim_sum, dtype=jnp.float32)
    gx_ref[...] = jnp.full((1, 1, 1), gx_sum, dtype=jnp.float32)
    gy_ref[...] = jnp.full((1, 1, 1), gy_sum, dtype=jnp.float32)


def combined_loss(pred, target,
                  lambda_ssim=_LAMBDA_SSIM, lambda_grad=_LAMBDA_GRAD):
    """pred, target: (N, 1, H, W) float32 (PyTorch NCHW, single channel)."""
    assert pred.shape == target.shape and pred.ndim == 4 and pred.shape[1] == 1
    n, _, h, w = pred.shape
    p = pred[:, 0].astype(jnp.float32)   # (N, H, W); no HBM-side padding
    t = target[:, 0].astype(jnp.float32)

    img_spec = pl.BlockSpec((1, h, w), lambda i: (i, 0, 0))
    part_spec = pl.BlockSpec((1, 1, 1), lambda i: (i, 0, 0))
    part_shape = jax.ShapeDtypeStruct((n, 1, 1), jnp.float32)

    ssim_sums, gx_sums, gy_sums = pl.pallas_call(
        combined_loss_kernel,
        out_shape=(part_shape, part_shape, part_shape),
        grid_spec=pltpu.PrefetchScalarGridSpec(
            num_scalar_prefetch=0,
            grid=(n,),
            in_specs=[img_spec, img_spec],
            out_specs=(part_spec, part_spec, part_spec),
            scratch_shapes=[
                pltpu.VMEM((h + 2 * _PAD, w + 2 * _PAD), jnp.float32),
                pltpu.VMEM((h + 2 * _PAD, w + 2 * _PAD), jnp.float32),
            ]),
        compiler_params=pltpu.CompilerParams(
            # No cross-step state -> batch axis can shard over v7x's 2 TCs.
            dimension_semantics=("parallel",),
            vmem_limit_bytes=32 * 1024 * 1024),
    )(p, t)

    # Normalise ONCE with the global element count (correct tiled mean).
    inv_count = 1.0 / float(n * h * w)
    ssim_loss = 1.0 - jnp.sum(ssim_sums) * inv_count
    grad_loss = (jnp.sum(gx_sums) + jnp.sum(gy_sums)) * inv_count
    return lambda_ssim * ssim_loss + lambda_grad * grad_loss


def _reference_combined_loss(pred, target,
                             lambda_ssim=_LAMBDA_SSIM,
                             lambda_grad=_LAMBDA_GRAD):
    # Pure-JAX reference mirroring the PyTorch CombinedLoss forward.
    pred = pred.astype(jnp.float32)
    target = target.astype(jnp.float32)

    def avg_pool(x):  # F.avg_pool2d(x, 11, stride=1, padding=5), incl. pad
        s = jax.lax.reduce_window(
            x, 0.0, jax.lax.add,
            window_dimensions=(1, 1, _WIN, _WIN),
            window_strides=(1, 1, 1, 1),
            padding=((0, 0), (0, 0), (_PAD, _PAD), (_PAD, _PAD)))
        return s / float(_WIN * _WIN)

    mu_p, mu_t = avg_pool(pred), avg_pool(target)
    sigma_p = avg_pool(pred * pred) - mu_p ** 2
    sigma_t = avg_pool(target * target) - mu_t ** 2
    sigma_pt = avg_pool(pred * target) - mu_p * mu_t
    ssim = ((2 * mu_p * mu_t + _C1) * (2 * sigma_pt + _C2)
            / ((mu_p ** 2 + mu_t ** 2 + _C1) * (sigma_p + sigma_t + _C2)))
    ssim_loss = 1.0 - jnp.mean(ssim)

    def conv3x3(img, k):  # Conv2d(1,1,3,padding=1,bias=False) cross-corr.
        x = jnp.pad(img[:, 0], ((0, 0), (1, 1), (1, 1)))
        nb, hp, wp = x.shape
        hh, ww = hp - 2, wp - 2
        acc = jnp.zeros((nb, hh, ww), jnp.float32)
        for dy in range(3):
            for dx in range(3):
                if k[dy][dx] != 0.0:
                    acc = acc + k[dy][dx] * x[:, dy:dy + hh, dx:dx + ww]
        return acc

    gx = conv3x3(pred, SOBEL_X) - conv3x3(target, SOBEL_X)
    gy = conv3x3(pred, SOBEL_Y) - conv3x3(target, SOBEL_Y)
    grad_loss = jnp.mean(jnp.abs(gx)) + jnp.mean(jnp.abs(gy))

    return lambda_ssim * ssim_loss + lambda_grad * grad_loss


if __name__ == "__main__":
    key = jax.random.PRNGKey(0)
    k1, k2 = jax.random.split(key)
    pred = jax.random.normal(k1, (2, 1, 16, 16), dtype=jnp.float32)
    target = jax.random.normal(k2, (2, 1, 16, 16), dtype=jnp.float32)

    loss = jax.block_until_ready(combined_loss(pred, target))
    ref = jax.block_until_ready(_reference_combined_loss(pred, target))
    assert jnp.allclose(loss, ref, rtol=1e-4, atol=1e-4), (loss, ref)
    print("KERNEL_OK")
</pallas_src>

<mosaic_0001>
module attributes {stable_mosaic.version = 11 : i64} {
  func.func @combined_loss_kernel(%arg0: i32, %arg1: memref<1x16x16xf32, #tpu.memory_space<vmem>>, %arg2: memref<1x16x16xf32, #tpu.memory_space<vmem>>, %arg3: memref<1x1x1xf32, #tpu.memory_space<vmem>>, %arg4: memref<1x1x1xf32, #tpu.memory_space<vmem>>, %arg5: memref<1x1x1xf32, #tpu.memory_space<vmem>>, %arg6: memref<26x26xf32, #tpu.memory_space<vmem>>, %arg7: memref<26x26xf32, #tpu.memory_space<vmem>>) attributes {dimension_semantics = [#tpu.dimension_semantics<parallel>], iteration_bounds = array<i64: 2>, scalar_prefetch = 0 : i64, scratch_operands = 2 : i64, tpu.core_type = #tpu.core_type<tc>, window_params = [{transform_indices = @transform_0, window_bounds = array<i64: 1, 16, 16>}, {transform_indices = @transform_1, window_bounds = array<i64: 1, 16, 16>}, {transform_indices = @transform_2, window_bounds = array<i64: 1, 1, 1>}, {transform_indices = @transform_3, window_bounds = array<i64: 1, 1, 1>}, {transform_indices = @transform_4, window_bounds = array<i64: 1, 1, 1>}]} {
    %c0 = arith.constant 0 : index
    %c0_0 = arith.constant 0 : index
    %c0_1 = arith.constant 0 : index
    %0 = vector.load %arg1[%c0, %c0_0, %c0_1] : memref<1x16x16xf32, #tpu.memory_space<vmem>>, vector<1x16x16xf32>
    %1 = vector.shape_cast %0 : vector<1x16x16xf32> to vector<16x16xf32>
    %c0_2 = arith.constant 0 : index
    %c0_3 = arith.constant 0 : index
    %c0_4 = arith.constant 0 : index
    %2 = vector.load %arg2[%c0_2, %c0_3, %c0_4] : memref<1x16x16xf32, #tpu.memory_space<vmem>>, vector<1x16x16xf32>
    %3 = vector.shape_cast %2 : vector<1x16x16xf32> to vector<16x16xf32>
    %cst = arith.constant 0.000000e+00 : f32
    %4 = vector.broadcast %cst : f32 to vector<26x26xf32>
    %c0_5 = arith.constant 0 : index
    %c0_6 = arith.constant 0 : index
    %5 = vector.load %arg6[%c0_5, %c0_6] : memref<26x26xf32, #tpu.memory_space<vmem>>, vector<26x26xf32>
    tpu.vector_store %arg6[%c0_5, %c0_6], %4 {strides = array<i32>} : memref<26x26xf32, #tpu.memory_space<vmem>>, vector<26x26xf32>,
    %cst_7 = arith.constant 0.000000e+00 : f32
    %6 = vector.broadcast %cst_7 : f32 to vector<26x26xf32>
    %c0_8 = arith.constant 0 : index
    %c0_9 = arith.constant 0 : index
    %7 = vector.load %arg7[%c0_8, %c0_9] : memref<26x26xf32, #tpu.memory_space<vmem>>, vector<26x26xf32>
    tpu.vector_store %arg7[%c0_8, %c0_9], %6 {strides = array<i32>} : memref<26x26xf32, #tpu.memory_space<vmem>>, vector<26x26xf32>,
    %c5 = arith.constant 5 : index
    %c5_10 = arith.constant 5 : index
    %8 = vector.load %arg6[%c5, %c5_10] : memref<26x26xf32, #tpu.memory_space<vmem>>, vector<16x16xf32>
    tpu.vector_store %arg6[%c5, %c5_10], %1 {strides = array<i32>} : memref<26x26xf32, #tpu.memory_space<vmem>>, vector<16x16xf32>,
    %c5_11 = arith.constant 5 : index
    %c5_12 = arith.constant 5 : index
    %9 = vector.load %arg7[%c5_11, %c5_12] : memref<26x26xf32, #tpu.memory_space<vmem>>, vector<16x16xf32>
    tpu.vector_store %arg7[%c5_11, %c5_12], %3 {strides = array<i32>} : memref<26x26xf32, #tpu.memory_space<vmem>>, vector<16x16xf32>,
    %c0_13 = arith.constant 0 : index
    %c0_14 = arith.constant 0 : index
    %10 = vector.load %arg6[%c0_13, %c0_14] : memref<26x26xf32, #tpu.memory_space<vmem>>, vector<26x26xf32>
    %c0_15 = arith.constant 0 : index
    %c0_16 = arith.constant 0 : index
    %11 = vector.load %arg7[%c0_15, %c0_16] : memref<26x26xf32, #tpu.memory_space<vmem>>, vector<26x26xf32>
    %12 = vector.extract_strided_slice %10 {offsets = [0, 0], sizes = [16, 26], strides = [1, 1]} : vector<26x26xf32> to vector<16x26xf32>
    %13 = vector.extract_strided_slice %10 {offsets = [1, 0], sizes = [16, 26], strides = [1, 1]} : vector<26x26xf32> to vector<16x26xf32>
    %14 = arith.addf %12, %13 : vector<16x26xf32>
    %15 = vector.extract_strided_slice %10 {offsets = [2, 0], sizes = [16, 26], strides = [1, 1]} : vector<26x26xf32> to vector<16x26xf32>
    %16 = arith.addf %14, %15 : vector<16x26xf32>
    %17 = vector.extract_strided_slice %10 {offsets = [3, 0], sizes = [16, 26], strides = [1, 1]} : vector<26x26xf32> to vector<16x26xf32>
    %18 = arith.addf %16, %17 : vector<16x26xf32>
    %19 = vector.extract_strided_slice %10 {offsets = [4, 0], sizes = [16, 26], strides = [1, 1]} : vector<26x26xf32> to vector<16x26xf32>
    %20 = arith.addf %18, %19 : vector<16x26xf32>
    %21 = vector.extract_strided_slice %10 {offsets = [5, 0], sizes = [16, 26], strides = [1, 1]} : vector<26x26xf32> to vector<16x26xf32>
    %22 = arith.addf %20, %21 : vector<16x26xf32>
    %23 = vector.extract_strided_slice %10 {offsets = [6, 0], sizes = [16, 26], strides = [1, 1]} : vector<26x26xf32> to vector<16x26xf32>
    %24 = arith.addf %22, %23 : vector<16x26xf32>
    %25 = vector.extract_strided_slice %10 {offsets = [7, 0], sizes = [16, 26], strides = [1, 1]} : vector<26x26xf32> to vector<16x26xf32>
    %26 = arith.addf %24, %25 : vector<16x26xf32>
    %27 = vector.extract_strided_slice %10 {offsets = [8, 0], sizes = [16, 26], strides = [1, 1]} : vector<26x26xf32> to vector<16x26xf32>
    %28 = arith.addf %26, %27 : vector<16x26xf32>
    %29 = vector.extract_strided_slice %10 {offsets = [9, 0], sizes = [16, 26], strides = [1, 1]} : vector<26x26xf32> to vector<16x26xf32>
    %30 = arith.addf %28, %29 : vector<16x26xf32>
    %31 = vector.extract_strided_slice %10 {offsets = [10, 0], sizes = [16, 26], strides = [1, 1]} : vector<26x26xf32> to vector<16x26xf32>
    %32 = arith.addf %30, %31 : vector<16x26xf32>
    %33 = vector.extract_strided_slice %32 {offsets = [0, 0], sizes = [16, 16], strides = [1, 1]} : vector<16x26xf32> to vector<16x16xf32>
    %34 = vector.extract_strided_slice %32 {offsets = [0, 1], sizes = [16, 16], strides = [1, 1]} : vector<16x26xf32> to vector<16x16xf32>
    %35 = arith.addf %33, %34 : vector<16x16xf32>
    %36 = vector.extract_strided_slice %32 {offsets = [0, 2], sizes = [16, 16], strides = [1, 1]} : vector<16x26xf32> to vector<16x16xf32>
    %37 = arith.addf %35, %36 : vector<16x16xf32>
    %38 = vector.extract_strided_slice %32 {offsets = [0, 3], sizes = [16, 16], strides = [1, 1]} : vector<16x26xf32> to vector<16x16xf32>
    %39 = arith.addf %37, %38 : vector<16x16xf32>
    %40 = vector.extract_strided_slice %32 {offsets = [0, 4], sizes = [16, 16], strides = [1, 1]} : vector<16x26xf32> to vector<16x16xf32>
    %41 = arith.addf %39, %40 : vector<16x16xf32>
    %42 = vector.extract_strided_slice %32 {offsets = [0, 5], sizes = [16, 16], strides = [1, 1]} : vector<16x26xf32> to vector<16x16xf32>
    %43 = arith.addf %41, %42 : vector<16x16xf32>
    %44 = vector.extract_strided_slice %32 {offsets = [0, 6], sizes = [16, 16], strides = [1, 1]} : vector<16x26xf32> to vector<16x16xf32>
    %45 = arith.addf %43, %44 : vector<16x16xf32>
    %46 = vector.extract_strided_slice %32 {offsets = [0, 7], sizes = [16, 16], strides = [1, 1]} : vector<16x26xf32> to vector<16x16xf32>
    %47 = arith.addf %45, %46 : vector<16x16xf32>
    %48 = vector.extract_strided_slice %32 {offsets = [0, 8], sizes = [16, 16], strides = [1, 1]} : vector<16x26xf32> to vector<16x16xf32>
    %49 = arith.addf %47, %48 : vector<16x16xf32>
    %50 = vector.extract_strided_slice %32 {offsets = [0, 9], sizes = [16, 16], strides = [1, 1]} : vector<16x26xf32> to vector<16x16xf32>
    %51 = arith.addf %49, %50 : vector<16x16xf32>
    %52 = vector.extract_strided_slice %32 {offsets = [0, 10], sizes = [16, 16], strides = [1, 1]} : vector<16x26xf32> to vector<16x16xf32>
    %53 = arith.addf %51, %52 : vector<16x16xf32>
    %cst_17 = arith.constant 0.00826446246 : f32
    %54 = vector.broadcast %cst_17 : f32 to vector<16x16xf32>
    %55 = arith.mulf %53, %54 : vector<16x16xf32>
    %56 = vector.extract_strided_slice %11 {offsets = [0, 0], sizes = [16, 26], strides = [1, 1]} : vector<26x26xf32> to vector<16x26xf32>
    %57 = vector.extract_strided_slice %11 {offsets = [1, 0], sizes = [16, 26], strides = [1, 1]} : vector<26x26xf32> to vector<16x26xf32>
    %58 = arith.addf %56, %57 : vector<16x26xf32>
    %59 = vector.extract_strided_slice %11 {offsets = [2, 0], sizes = [16, 26], strides = [1, 1]} : vector<26x26xf32> to vector<16x26xf32>
    %60 = arith.addf %58, %59 : vector<16x26xf32>
    %61 = vector.extract_strided_slice %11 {offsets = [3, 0], sizes = [16, 26], strides = [1, 1]} : vector<26x26xf32> to vector<16x26xf32>
    %62 = arith.addf %60, %61 : vector<16x26xf32>
    %63 = vector.extract_strided_slice %11 {offsets = [4, 0], sizes = [16, 26], strides = [1, 1]} : vector<26x26xf32> to vector<16x26xf32>
    %64 = arith.addf %62, %63 : vector<16x26xf32>
    %65 = vector.extract_strided_slice %11 {offsets = [5, 0], sizes = [16, 26], strides = [1, 1]} : vector<26x26xf32> to vector<16x26xf32>
    %66 = arith.addf %64, %65 : vector<16x26xf32>
    %67 = vector.extract_strided_slice %11 {offsets = [6, 0], sizes = [16, 26], strides = [1, 1]} : vector<26x26xf32> to vector<16x26xf32>
    %68 = arith.addf %66, %67 : vector<16x26xf32>
    %69 = vector.extract_strided_slice %11 {offsets = [7, 0], sizes = [16, 26], strides = [1, 1]} : vector<26x26xf32> to vector<16x26xf32>
    %70 = arith.addf %68, %69 : vector<16x26xf32>
    %71 = vector.extract_strided_slice %11 {offsets = [8, 0], sizes = [16, 26], strides = [1, 1]} : vector<26x26xf32> to vector<16x26xf32>
    %72 = arith.addf %70, %71 : vector<16x26xf32>
    %73 = vector.extract_strided_slice %11 {offsets = [9, 0], sizes = [16, 26], strides = [1, 1]} : vector<26x26xf32> to vector<16x26xf32>
    %74 = arith.addf %72, %73 : vector<16x26xf32>
    %75 = vector.extract_strided_slice %11 {offsets = [10, 0], sizes = [16, 26], strides = [1, 1]} : vector<26x26xf32> to vector<16x26xf32>
    %76 = arith.addf %74, %75 : vector<16x26xf32>
    %77 = vector.extract_strided_slice %76 {offsets = [0, 0], sizes = [16, 16], strides = [1, 1]} : vector<16x26xf32> to vector<16x16xf32>
    %78 = vector.extract_strided_slice %76 {offsets = [0, 1], sizes = [16, 16], strides = [1, 1]} : vector<16x26xf32> to vector<16x16xf32>
    %79 = arith.addf %77, %78 : vector<16x16xf32>
    %80 = vector.extract_strided_slice %76 {offsets = [0, 2], sizes = [16, 16], strides = [1, 1]} : vector<16x26xf32> to vector<16x16xf32>
    %81 = arith.addf %79, %80 : vector<16x16xf32>
    %82 = vector.extract_strided_slice %76 {offsets = [0, 3], sizes = [16, 16], strides = [1, 1]} : vector<16x26xf32> to vector<16x16xf32>
    %83 = arith.addf %81, %82 : vector<16x16xf32>
    %84 = vector.extract_strided_slice %76 {offsets = [0, 4], sizes = [16, 16], strides = [1, 1]} : vector<16x26xf32> to vector<16x16xf32>
    %85 = arith.addf %83, %84 : vector<16x16xf32>
    %86 = vector.extract_strided_slice %76 {offsets = [0, 5], sizes = [16, 16], strides = [1, 1]} : vector<16x26xf32> to vector<16x16xf32>
    %87 = arith.addf %85, %86 : vector<16x16xf32>
    %88 = vector.extract_strided_slice %76 {offsets = [0, 6], sizes = [16, 16], strides = [1, 1]} : vector<16x26xf32> to vector<16x16xf32>
    %89 = arith.addf %87, %88 : vector<16x16xf32>
    %90 = vector.extract_strided_slice %76 {offsets = [0, 7], sizes = [16, 16], strides = [1, 1]} : vector<16x26xf32> to vector<16x16xf32>
    %91 = arith.addf %89, %90 : vector<16x16xf32>
    %92 = vector.extract_strided_slice %76 {offsets = [0, 8], sizes = [16, 16], strides = [1, 1]} : vector<16x26xf32> to vector<16x16xf32>
    %93 = arith.addf %91, %92 : vector<16x16xf32>
    %94 = vector.extract_strided_slice %76 {offsets = [0, 9], sizes = [16, 16], strides = [1, 1]} : vector<16x26xf32> to vector<16x16xf32>
    %95 = arith.addf %93, %94 : vector<16x16xf32>
    %96 = vector.extract_strided_slice %76 {offsets = [0, 10], sizes = [16, 16], strides = [1, 1]} : vector<16x26xf32> to vector<16x16xf32>
    %97 = arith.addf %95, %96 : vector<16x16xf32>
    %cst_18 = arith.constant 0.00826446246 : f32
    %98 = vector.broadcast %cst_18 : f32 to vector<16x16xf32>
    %99 = arith.mulf %97, %98 : vector<16x16xf32>
    %100 = arith.mulf %10, %10 : vector<26x26xf32>
    %101 = vector.extract_strided_slice %100 {offsets = [0, 0], sizes = [16, 26], strides = [1, 1]} : vector<26x26xf32> to vector<16x26xf32>
    %102 = vector.extract_strided_slice %100 {offsets = [1, 0], sizes = [16, 26], strides = [1, 1]} : vector<26x26xf32> to vector<16x26xf32>
    %103 = arith.addf %101, %102 : vector<16x26xf32>
    %104 = vector.extract_strided_slice %100 {offsets = [2, 0], sizes = [16, 26], strides = [1, 1]} : vector<26x26xf32> to vector<16x26xf32>
    %105 = arith.addf %103, %104 : vector<16x26xf32>
    %106 = vector.extract_strided_slice %100 {offsets = [3, 0], sizes = [16, 26], strides = [1, 1]} : vector<26x26xf32> to vector<16x26xf32>
    %107 = arith.addf %105, %106 : vector<16x26xf32>
    %108 = vector.extract_strided_slice %100 {offsets = [4, 0], sizes = [16, 26], strides = [1, 1]} : vector<26x26xf32> to vector<16x26xf32>
    %109 = arith.addf %107, %108 : vector<16x26xf32>
    %110 = vector.extract_strided_slice %100 {offsets = [5, 0], sizes = [16, 26], strides = [1, 1]} : vector<26x26xf32> to vector<16x26xf32>
    %111 = arith.addf %109, %110 : vector<16x26xf32>
    %112 = vector.extract_strided_slice %100 {offsets = [6, 0], sizes = [16, 26], strides = [1, 1]} : vector<26x26xf32> to vector<16x26xf32>
    %113 = arith.addf %111, %112 : vector<16x26xf32>
    %114 = vector.extract_strided_slice %100 {offsets = [7, 0], sizes = [16, 26], strides = [1, 1]} : vector<26x26xf32> to vector<16x26xf32>
    %115 = arith.addf %113, %114 : vector<16x26xf32>
    %116 = vector.extract_strided_slice %100 {offsets = [8, 0], sizes = [16, 26], strides = [1, 1]} : vector<26x26xf32> to vector<16x26xf32>
    %117 = arith.addf %115, %116 : vector<16x26xf32>
    %118 = vector.extract_strided_slice %100 {offsets = [9, 0], sizes = [16, 26], strides = [1, 1]} : vector<26x26xf32> to vector<16x26xf32>
    %119 = arith.addf %117, %118 : vector<16x26xf32>
    %120 = vector.extract_strided_slice %100 {offsets = [10, 0], sizes = [16, 26], strides = [1, 1]} : vector<26x26xf32> to vector<16x26xf32>
    %121 = arith.addf %119, %120 : vector<16x26xf32>
    %122 = vector.extract_strided_slice %121 {offsets = [0, 0], sizes = [16, 16], strides = [1, 1]} : vector<16x26xf32> to vector<16x16xf32>
    %123 = vector.extract_strided_slice %121 {offsets = [0, 1], sizes = [16, 16], strides = [1, 1]} : vector<16x26xf32> to vector<16x16xf32>
    %124 = arith.addf %122, %123 : vector<16x16xf32>
    %125 = vector.extract_strided_slice %121 {offsets = [0, 2], sizes = [16, 16], strides = [1, 1]} : vector<16x26xf32> to vector<16x16xf32>
    %126 = arith.addf %124, %125 : vector<16x16xf32>
    %127 = vector.extract_strided_slice %121 {offsets = [0, 3], sizes = [16, 16], strides = [1, 1]} : vector<16x26xf32> to vector<16x16xf32>
    %128 = arith.addf %126, %127 : vector<16x16xf32>
    %129 = vector.extract_strided_slice %121 {offsets = [0, 4], sizes = [16, 16], strides = [1, 1]} : vector<16x26xf32> to vector<16x16xf32>
    %130 = arith.addf %128, %129 : vector<16x16xf32>
    %131 = vector.extract_strided_slice %121 {offsets = [0, 5], sizes = [16, 16], strides = [1, 1]} : vector<16x26xf32> to vector<16x16xf32>
    %132 = arith.addf %130, %131 : vector<16x16xf32>
    %133 = vector.extract_strided_slice %121 {offsets = [0, 6], sizes = [16, 16], strides = [1, 1]} : vector<16x26xf32> to vector<16x16xf32>
    %134 = arith.addf %132, %133 : vector<16x16xf32>
    %135 = vector.extract_strided_slice %121 {offsets = [0, 7], sizes = [16, 16], strides = [1, 1]} : vector<16x26xf32> to vector<16x16xf32>
    %136 = arith.addf %134, %135 : vector<16x16xf32>
    %137 = vector.extract_strided_slice %121 {offsets = [0, 8], sizes = [16, 16], strides = [1, 1]} : vector<16x26xf32> to vector<16x16xf32>
    %138 = arith.addf %136, %137 : vector<16x16xf32>
    %139 = vector.extract_strided_slice %121 {offsets = [0, 9], sizes = [16, 16], strides = [1, 1]} : vector<16x26xf32> to vector<16x16xf32>
    %140 = arith.addf %138, %139 : vector<16x16xf32>
    %141 = vector.extract_strided_slice %121 {offsets = [0, 10], sizes = [16, 16], strides = [1, 1]} : vector<16x26xf32> to vector<16x16xf32>
    %142 = arith.addf %140, %141 : vector<16x16xf32>
    %cst_19 = arith.constant 0.00826446246 : f32
    %143 = vector.broadcast %cst_19 : f32 to vector<16x16xf32>
    %144 = arith.mulf %142, %143 : vector<16x16xf32>
    %145 = arith.mulf %11, %11 : vector<26x26xf32>
    %146 = vector.extract_strided_slice %145 {offsets = [0, 0], sizes = [16, 26], strides = [1, 1]} : vector<26x26xf32> to vector<16x26xf32>
    %147 = vector.extract_strided_slice %145 {offsets = [1, 0], sizes = [16, 26], strides = [1, 1]} : vector<26x26xf32> to vector<16x26xf32>
    %148 = arith.addf %146, %147 : vector<16x26xf32>
    %149 = vector.extract_strided_slice %145 {offsets = [2, 0], sizes = [16, 26], strides = [1, 1]} : vector<26x26xf32> to vector<16x26xf32>
    %150 = arith.addf %148, %149 : vector<16x26xf32>
    %151 = vector.extract_strided_slice %145 {offsets = [3, 0], sizes = [16, 26], strides = [1, 1]} : vector<26x26xf32> to vector<16x26xf32>
    %152 = arith.addf %150, %151 : vector<16x26xf32>
    %153 = vector.extract_strided_slice %145 {offsets = [4, 0], sizes = [16, 26], strides = [1, 1]} : vector<26x26xf32> to vector<16x26xf32>
    %154 = arith.addf %152, %153 : vector<16x26xf32>
    %155 = vector.extract_strided_slice %145 {offsets = [5, 0], sizes = [16, 26], strides = [1, 1]} : vector<26x26xf32> to vector<16x26xf32>
    %156 = arith.addf %154, %155 : vector<16x26xf32>
    %157 = vector.extract_strided_slice %145 {offsets = [6, 0], sizes = [16, 26], strides = [1, 1]} : vector<26x26xf32> to vector<16x26xf32>
    %158 = arith.addf %156, %157 : vector<16x26xf32>
    %159 = vector.extract_strided_slice %145 {offsets = [7, 0], sizes = [16, 26], strides = [1, 1]} : vector<26x26xf32> to vector<16x26xf32>
    %160 = arith.addf %158, %159 : vector<16x26xf32>
    %161 = vector.extract_strided_slice %145 {offsets = [8, 0], sizes = [16, 26], strides = [1, 1]} : vector<26x26xf32> to vector<16x26xf32>
    %162 = arith.addf %160, %161 : vector<16x26xf32>
    %163 = vector.extract_strided_slice %145 {offsets = [9, 0], sizes = [16, 26], strides = [1, 1]} : vector<26x26xf32> to vector<16x26xf32>
    %164 = arith.addf %162, %163 : vector<16x26xf32>
    %165 = vector.extract_strided_slice %145 {offsets = [10, 0], sizes = [16, 26], strides = [1, 1]} : vector<26x26xf32> to vector<16x26xf32>
    %166 = arith.addf %164, %165 : vector<16x26xf32>
    %167 = vector.extract_strided_slice %166 {offsets = [0, 0], sizes = [16, 16], strides = [1, 1]} : vector<16x26xf32> to vector<16x16xf32>
    %168 = vector.extract_strided_slice %166 {offsets = [0, 1], sizes = [16, 16], strides = [1, 1]} : vector<16x26xf32> to vector<16x16xf32>
    %169 = arith.addf %167, %168 : vector<16x16xf32>
    %170 = vector.extract_strided_slice %166 {offsets = [0, 2], sizes = [16, 16], strides = [1, 1]} : vector<16x26xf32> to vector<16x16xf32>
    %171 = arith.addf %169, %170 : vector<16x16xf32>
    %172 = vector.extract_strided_slice %166 {offsets = [0, 3], sizes = [16, 16], strides = [1, 1]} : vector<16x26xf32> to vector<16x16xf32>
    %173 = arith.addf %171, %172 : vector<16x16xf32>
    %174 = vector.extract_strided_slice %166 {offsets = [0, 4], sizes = [16, 16], strides = [1, 1]} : vector<16x26xf32> to vector<16x16xf32>
    %175 = arith.addf %173, %174 : vector<16x16xf32>
    %176 = vector.extract_strided_slice %166 {offsets = [0, 5], sizes = [16, 16], strides = [1, 1]} : vector<16x26xf32> to vector<16x16xf32>
    %177 = arith.addf %175, %176 : vector<16x16xf32>
    %178 = vector.extract_strided_slice %166 {offsets = [0, 6], sizes = [16, 16], strides = [1, 1]} : vector<16x26xf32> to vector<16x16xf32>
    %179 = arith.addf %177, %178 : vector<16x16xf32>
    %180 = vector.extract_strided_slice %166 {offsets = [0, 7], sizes = [16, 16], strides = [1, 1]} : vector<16x26xf32> to vector<16x16xf32>
    %181 = arith.addf %179, %180 : vector<16x16xf32>
    %182 = vector.extract_strided_slice %166 {offsets = [0, 8], sizes = [16, 16], strides = [1, 1]} : vector<16x26xf32> to vector<16x16xf32>
    %183 = arith.addf %181, %182 : vector<16x16xf32>
    %184 = vector.extract_strided_slice %166 {offsets = [0, 9], sizes = [16, 16], strides = [1, 1]} : vector<16x26xf32> to vector<16x16xf32>
    %185 = arith.addf %183, %184 : vector<16x16xf32>
    %186 = vector.extract_strided_slice %166 {offsets = [0, 10], sizes = [16, 16], strides = [1, 1]} : vector<16x26xf32> to vector<16x16xf32>
    %187 = arith.addf %185, %186 : vector<16x16xf32>
    %cst_20 = arith.constant 0.00826446246 : f32
    %188 = vector.broadcast %cst_20 : f32 to vector<16x16xf32>
    %189 = arith.mulf %187, %188 : vector<16x16xf32>
    %190 = arith.mulf %10, %11 : vector<26x26xf32>
    %191 = vector.extract_strided_slice %190 {offsets = [0, 0], sizes = [16, 26], strides = [1, 1]} : vector<26x26xf32> to vector<16x26xf32>
    %192 = vector.extract_strided_slice %190 {offsets = [1, 0], sizes = [16, 26], strides = [1, 1]} : vector<26x26xf32> to vector<16x26xf32>
    %193 = arith.addf %191, %192 : vector<16x26xf32>
    %194 = vector.extract_strided_slice %190 {offsets = [2, 0], sizes = [16, 26], strides = [1, 1]} : vector<26x26xf32> to vector<16x26xf32>
    %195 = arith.addf %193, %194 : vector<16x26xf32>
    %196 = vector.extract_strided_slice %190 {offsets = [3, 0], sizes = [16, 26], strides = [1, 1]} : vector<26x26xf32> to vector<16x26xf32>
    %197 = arith.addf %195, %196 : vector<16x26xf32>
    %198 = vector.extract_strided_slice %190 {offsets = [4, 0], sizes = [16, 26], strides = [1, 1]} : vector<26x26xf32> to vector<16x26xf32>
    %199 = arith.addf %197, %198 : vector<16x26xf32>
    %200 = vector.extract_strided_slice %190 {offsets = [5, 0], sizes = [16, 26], strides = [1, 1]} : vector<26x26xf32> to vector<16x26xf32>
    %201 = arith.addf %199, %200 : vector<16x26xf32>
    %202 = vector.extract_strided_slice %190 {offsets = [6, 0], sizes = [16, 26], strides = [1, 1]} : vector<26x26xf32> to vector<16x26xf32>
    %203 = arith.addf %201, %202 : vector<16x26xf32>
    %204 = vector.extract_strided_slice %190 {offsets = [7, 0], sizes = [16, 26], strides = [1, 1]} : vector<26x26xf32> to vector<16x26xf32>
    %205 = arith.addf %203, %204 : vector<16x26xf32>
    %206 = vector.extract_strided_slice %190 {offsets = [8, 0], sizes = [16, 26], strides = [1, 1]} : vector<26x26xf32> to vector<16x26xf32>
    %207 = arith.addf %205, %206 : vector<16x26xf32>
    %208 = vector.extract_strided_slice %190 {offsets = [9, 0], sizes = [16, 26], strides = [1, 1]} : vector<26x26xf32> to vector<16x26xf32>
    %209 = arith.addf %207, %208 : vector<16x26xf32>
    %210 = vector.extract_strided_slice %190 {offsets = [10, 0], sizes = [16, 26], strides = [1, 1]} : vector<26x26xf32> to vector<16x26xf32>
    %211 = arith.addf %209, %210 : vector<16x26xf32>
    %212 = vector.extract_strided_slice %211 {offsets = [0, 0], sizes = [16, 16], strides = [1, 1]} : vector<16x26xf32> to vector<16x16xf32>
    %213 = vector.extract_strided_slice %211 {offsets = [0, 1], sizes = [16, 16], strides = [1, 1]} : vector<16x26xf32> to vector<16x16xf32>
    %214 = arith.addf %212, %213 : vector<16x16xf32>
    %215 = vector.extract_strided_slice %211 {offsets = [0, 2], sizes = [16, 16], strides = [1, 1]} : vector<16x26xf32> to vector<16x16xf32>
    %216 = arith.addf %214, %215 : vector<16x16xf32>
    %217 = vector.extract_strided_slice %211 {offsets = [0, 3], sizes = [16, 16], strides = [1, 1]} : vector<16x26xf32> to vector<16x16xf32>
    %218 = arith.addf %216, %217 : vector<16x16xf32>
    %219 = vector.extract_strided_slice %211 {offsets = [0, 4], sizes = [16, 16], strides = [1, 1]} : vector<16x26xf32> to vector<16x16xf32>
    %220 = arith.addf %218, %219 : vector<16x16xf32>
    %221 = vector.extract_strided_slice %211 {offsets = [0, 5], sizes = [16, 16], strides = [1, 1]} : vector<16x26xf32> to vector<16x16xf32>
    %222 = arith.addf %220, %221 : vector<16x16xf32>
    %223 = vector.extract_strided_slice %211 {offsets = [0, 6], sizes = [16, 16], strides = [1, 1]} : vector<16x26xf32> to vector<16x16xf32>
    %224 = arith.addf %222, %223 : vector<16x16xf32>
    %225 = vector.extract_strided_slice %211 {offsets = [0, 7], sizes = [16, 16], strides = [1, 1]} : vector<16x26xf32> to vector<16x16xf32>
    %226 = arith.addf %224, %225 : vector<16x16xf32>
    %227 = vector.extract_strided_slice %211 {offsets = [0, 8], sizes = [16, 16], strides = [1, 1]} : vector<16x26xf32> to vector<16x16xf32>
    %228 = arith.addf %226, %227 : vector<16x16xf32>
    %229 = vector.extract_strided_slice %211 {offsets = [0, 9], sizes = [16, 16], strides = [1, 1]} : vector<16x26xf32> to vector<16x16xf32>
    %230 = arith.addf %228, %229 : vector<16x16xf32>
    %231 = vector.extract_strided_slice %211 {offsets = [0, 10], sizes = [16, 16], strides = [1, 1]} : vector<16x26xf32> to vector<16x16xf32>
    %232 = arith.addf %230, %231 : vector<16x16xf32>
    %cst_21 = arith.constant 0.00826446246 : f32
    %233 = vector.broadcast %cst_21 : f32 to vector<16x16xf32>
    %234 = arith.mulf %232, %233 : vector<16x16xf32>
    %235 = arith.mulf %55, %55 : vector<16x16xf32>
    %236 = arith.subf %144, %235 : vector<16x16xf32>
    %237 = arith.mulf %99, %99 : vector<16x16xf32>
    %238 = arith.subf %189, %237 : vector<16x16xf32>
    %239 = arith.mulf %55, %99 : vector<16x16xf32>
    %240 = arith.subf %234, %239 : vector<16x16xf32>
    %cst_22 = arith.constant 2.000000e+00 : f32
    %241 = vector.broadcast %cst_22 : f32 to vector<16x16xf32>
    %242 = arith.mulf %241, %55 : vector<16x16xf32>
    %243 = arith.mulf %242, %99 : vector<16x16xf32>
    %cst_23 = arith.constant 9.99999974E-5 : f32
    %244 = vector.broadcast %cst_23 : f32 to vector<16x16xf32>
    %245 = arith.addf %243, %244 : vector<16x16xf32>
    %cst_24 = arith.constant 2.000000e+00 : f32
    %246 = vector.broadcast %cst_24 : f32 to vector<16x16xf32>
    %247 = arith.mulf %246, %240 : vector<16x16xf32>
    %cst_25 = arith.constant 8.99999984E-4 : f32
    %248 = vector.broadcast %cst_25 : f32 to vector<16x16xf32>
    %249 = arith.addf %247, %248 : vector<16x16xf32>
    %250 = arith.mulf %245, %249 : vector<16x16xf32>
    %251 = arith.mulf %55, %55 : vector<16x16xf32>
    %252 = arith.mulf %99, %99 : vector<16x16xf32>
    %253 = arith.addf %251, %252 : vector<16x16xf32>
    %cst_26 = arith.constant 9.99999974E-5 : f32
    %254 = vector.broadcast %cst_26 : f32 to vector<16x16xf32>
    %255 = arith.addf %253, %254 : vector<16x16xf32>
    %256 = arith.addf %236, %238 : vector<16x16xf32>
    %cst_27 = arith.constant 8.99999984E-4 : f32
    %257 = vector.broadcast %cst_27 : f32 to vector<16x16xf32>
    %258 = arith.addf %256, %257 : vector<16x16xf32>
    %259 = arith.mulf %255, %258 : vector<16x16xf32>
    %260 = arith.divf %250, %259 : vector<16x16xf32>
    %261 = vector.shape_cast %260 : vector<16x16xf32> to vector<1x16x16xf32>
    %cst_28 = arith.constant dense<0.000000e+00> : vector<1xf32>
    %262 = vector.multi_reduction <add>, %261, %cst_28 [1, 2] : vector<1x16x16xf32> to vector<1xf32>
    %263 = vector.shape_cast %262 : vector<1xf32> to vector<1x1x1xf32>
    %264 = vector.extract %263[0, 0, 0] : f32 from vector<1x1x1xf32>
    %265 = vector.extract_strided_slice %10 {offsets = [4, 4], sizes = [18, 18], strides = [1, 1]} : vector<26x26xf32> to vector<18x18xf32>
    %266 = vector.extract_strided_slice %11 {offsets = [4, 4], sizes = [18, 18], strides = [1, 1]} : vector<26x26xf32> to vector<18x18xf32>
    %267 = arith.subf %265, %266 : vector<18x18xf32>
    %268 = vector.extract_strided_slice %267 {offsets = [0, 0], sizes = [16, 18], strides = [1, 1]} : vector<18x18xf32> to vector<16x18xf32>
    %269 = vector.extract_strided_slice %267 {offsets = [1, 0], sizes = [16, 18], strides = [1, 1]} : vector<18x18xf32> to vector<16x18xf32>
    %cst_29 = arith.constant 2.000000e+00 : f32
    %270 = vector.broadcast %cst_29 : f32 to vector<16x18xf32>
    %271 = arith.mulf %270, %269 : vector<16x18xf32>
    %272 = arith.addf %268, %271 : vector<16x18xf32>
    %273 = vector.extract_strided_slice %267 {offsets = [2, 0], sizes = [16, 18], strides = [1, 1]} : vector<18x18xf32> to vector<16x18xf32>
    %274 = arith.addf %272, %273 : vector<16x18xf32>
    %275 = vector.extract_strided_slice %267 {offsets = [2, 0], sizes = [16, 18], strides = [1, 1]} : vector<18x18xf32> to vector<16x18xf32>
    %276 = vector.extract_strided_slice %267 {offsets = [0, 0], sizes = [16, 18], strides = [1, 1]} : vector<18x18xf32> to vector<16x18xf32>
    %277 = arith.subf %275, %276 : vector<16x18xf32>
    %278 = vector.extract_strided_slice %274 {offsets = [0, 2], sizes = [16, 16], strides = [1, 1]} : vector<16x18xf32> to vector<16x16xf32>
    %279 = vector.extract_strided_slice %274 {offsets = [0, 0], sizes = [16, 16], strides = [1, 1]} : vector<16x18xf32> to vector<16x16xf32>
    %280 = arith.subf %278, %279 : vector<16x16xf32>
    %281 = vector.extract_strided_slice %277 {offsets = [0, 0], sizes = [16, 16], strides = [1, 1]} : vector<16x18xf32> to vector<16x16xf32>
    %282 = vector.extract_strided_slice %277 {offsets = [0, 1], sizes = [16, 16], strides = [1, 1]} : vector<16x18xf32> to vector<16x16xf32>
    %cst_30 = arith.constant 2.000000e+00 : f32
    %283 = vector.broadcast %cst_30 : f32 to vector<16x16xf32>
    %284 = arith.mulf %283, %282 : vector<16x16xf32>
    %285 = arith.addf %281, %284 : vector<16x16xf32>
    %286 = vector.extract_strided_slice %277 {offsets = [0, 2], sizes = [16, 16], strides = [1, 1]} : vector<16x18xf32> to vector<16x16xf32>
    %287 = arith.addf %285, %286 : vector<16x16xf32>
    %288 = math.absf %280 : vector<16x16xf32>
    %289 = vector.shape_cast %288 : vector<16x16xf32> to vector<1x16x16xf32>
    %cst_31 = arith.constant dense<0.000000e+00> : vector<1xf32>
    %290 = vector.multi_reduction <add>, %289, %cst_31 [1, 2] : vector<1x16x16xf32> to vector<1xf32>
    %291 = vector.shape_cast %290 : vector<1xf32> to vector<1x1x1xf32>
    %292 = vector.extract %291[0, 0, 0] : f32 from vector<1x1x1xf32>
    %293 = math.absf %287 : vector<16x16xf32>
    %294 = vector.shape_cast %293 : vector<16x16xf32> to vector<1x16x16xf32>
    %cst_32 = arith.constant dense<0.000000e+00> : vector<1xf32>
    %295 = vector.multi_reduction <add>, %294, %cst_32 [1, 2] : vector<1x16x16xf32> to vector<1xf32>
    %296 = vector.shape_cast %295 : vector<1xf32> to vector<1x1x1xf32>
    %297 = vector.extract %296[0, 0, 0] : f32 from vector<1x1x1xf32>
    %298 = vector.broadcast %264 : f32 to vector<1x1x1xf32>
    %c0_33 = arith.constant 0 : index
    %c0_34 = arith.constant 0 : index
    %c0_35 = arith.constant 0 : index
    %299 = vector.load %arg3[%c0_33, %c0_34, %c0_35] : memref<1x1x1xf32, #tpu.memory_space<vmem>>, vector<1x1x1xf32>
    tpu.vector_store %arg3[%c0_33, %c0_34, %c0_35], %298 {strides = array<i32>} : memref<1x1x1xf32, #tpu.memory_space<vmem>>, vector<1x1x1xf32>,
    %300 = vector.broadcast %292 : f32 to vector<1x1x1xf32>
    %c0_36 = arith.constant 0 : index
    %c0_37 = arith.constant 0 : index
    %c0_38 = arith.constant 0 : index
    %301 = vector.load %arg4[%c0_36, %c0_37, %c0_38] : memref<1x1x1xf32, #tpu.memory_space<vmem>>, vector<1x1x1xf32>
    tpu.vector_store %arg4[%c0_36, %c0_37, %c0_38], %300 {strides = array<i32>} : memref<1x1x1xf32, #tpu.memory_space<vmem>>, vector<1x1x1xf32>,
    %302 = vector.broadcast %297 : f32 to vector<1x1x1xf32>
    %c0_39 = arith.constant 0 : index
    %c0_40 = arith.constant 0 : index
    %c0_41 = arith.constant 0 : index
    %303 = vector.load %arg5[%c0_39, %c0_40, %c0_41] : memref<1x1x1xf32, #tpu.memory_space<vmem>>, vector<1x1x1xf32>
    tpu.vector_store %arg5[%c0_39, %c0_40, %c0_41], %302 {strides = array<i32>} : memref<1x1x1xf32, #tpu.memory_space<vmem>>, vector<1x1x1xf32>,
    return
  }
  func.func @transform_0(%arg0: i32) -> (i32, i32, i32) {
    %c0_i32 = arith.constant 0 : i32
    %c0_i32_0 = arith.constant 0 : i32
    %c0_i32_1 = arith.constant 0 : i32
    return %arg0, %c0_i32, %c0_i32_0 : i32, i32, i32
  }
  func.func @transform_1(%arg0: i32) -> (i32, i32, i32) {
    %c0_i32 = arith.constant 0 : i32
    %c0_i32_0 = arith.constant 0 : i32
    %c0_i32_1 = arith.constant 0 : i32
    return %arg0, %c0_i32, %c0_i32_0 : i32, i32, i32
  }
  func.func @transform_2(%arg0: i32) -> (i32, i32, i32) {
    %c0_i32 = arith.constant 0 : i32
    %c0_i32_0 = arith.constant 0 : i32
    %c0_i32_1 = arith.constant 0 : i32
    return %arg0, %c0_i32, %c0_i32_0 : i32, i32, i32
  }
  func.func @transform_3(%arg0: i32) -> (i32, i32, i32) {
    %c0_i32 = arith.constant 0 : i32
    %c0_i32_0 = arith.constant 0 : i32
    %c0_i32_1 = arith.constant 0 : i32
    return %arg0, %c0_i32, %c0_i32_0 : i32, i32, i32
  }
  func.func @transform_4(%arg0: i32) -> (i32, i32, i32) {
    %c0_i32 = arith.constant 0 : i32
    %c0_i32_0 = arith.constant 0 : i32
    %c0_i32_1 = arith.constant 0 : i32
    return %arg0, %c0_i32, %c0_i32_0 : i32, i32, i32
  }
}

</mosaic_0001>

<bundles_post_ra>
// kernel: tpu_custom_call.1
= control target key start
LH: loop header
LB: loop body
LE: loop exit
PB: predicated region body
PF: predicated region fallthrough
CT: control target
= control target key end

     0   :  { %10 = vsyncpa [#allocation5], 0  ;;  %s2757_s0 = inlined_call_operand.hbm [shape: f32[2,16,16], index: 0, kind: input, shape index: {}]   ;;  %s2758_s1 = inlined_call_operand.hbm [shape: f32[2,16,16], index: 1, kind: input, shape index: {}]   ;;  %s2759_s2 = inlined_call_operand.vmem [shape: f32[2,1,1], index: 2, kind: output, shape index: {0}]   ;;  %s2760_s3 = inlined_call_operand.vmem [shape: f32[2,1,1], index: 3, kind: output, shape index: {1}]   ;;  %s2761_s4 = inlined_call_operand.vmem [shape: f32[2,1,1], index: 4, kind: output, shape index: {2}]  }
   0x1   :  { %12 = vsyncpa [#allocation5 + $0x1], 0 }
   0x2   :  { %13 = vsyncpa [#allocation7], 0 }
   0x3   :  { %15 = vsyncpa [#allocation7 + $0x1], 0  ;;  %s1716_s15 = smov 0   ;;  %s1718_s16 = smov 0  }
   0x4   :  { %s1720_s17 = smov 0   ;;  %s1722_s18 = smov 0  }
   0x5 LB: > { %s1735_s19 = sadd.s32 4294967295, %s1672_s18   ;;  %s1738_s20 = sadd.s32 1, %s1672_s18   ;;  %s1672_s18 = sphi %s1722_s18, %s2804_s18   ;;  %s1668_s17 = sphi %s1720_s17, %s2803_s17   ;;  %s1664_s16 = sphi %s1718_s16, %s2802_s16   ;;  %s1660_s15 = sphi %s1716_s15, %s2801_s15  }
   0x6   : > { %s25_s21 = ssub.s32 %s1672_s18, %s1738_s20  ;;  %s28_s22 = sadd.s32 1, %s1668_s17 }
   0x7   : > { %p26_p0 = scmp.eq.s32.totalorder %s25_s21, 0  ;;  %p35_p1 = scmp.ne.s32.totalorder %s1668_s17, %s1664_s16 }
   0x8   : > { %p36_p2 = scmp.eq.s32.totalorder %s1672_s18, 0  ;;  %p41_p3 = scmp.ne.s32.totalorder %s1664_s16, %s1660_s15 }
   0x9   : > { %s1748_s23 = scalar_select %p26_p0, %s1668_s17, %s28_s22  }
   0xa   : > { %p37_p4 = por %p36_p2, %p35_p1  ;;  %p42_p5 = scmp.eq.s32.totalorder %s1735_s19, 0 }
   0xb   : > { %p1522_p6 = scmp.lt.s32.totalorder %s1672_s18, 2  ;;  %s1757_s25 = sand.u32 1, %s1668_s17  }
   0xc   : > { %p1752_p7 = por %p42_p5, %p41_p3  ;;  %s1492_s26 = sshll.u32 %s1757_s25, 4 }
   0xd   : > { %s1503_s27 = sshll.u32 %s1672_s18, 8  ;;  %s173_s5 = scalar_lea.vmem [#allocation4], %s1492_s26 }
   0xe   : > { %s2767_s24 = scalar_select %p1752_p7, 1, 0 }
   0xf   : > { %s1766_s30 = scalar_lea.hbm %s2757_s0, %s1503_s27  ;;  %s180_s6 = sshll.u32 %s173_s5, 4  ;;  %s1770_s6 = int_to_ptr.vmem [resolvable:$true] %s180_s6 }
  0x10   : > { %p1772_p8 = pnand %p1522_p6, %p37_p4  ;;  %s170_s8 = scalar_lea.sflag [#allocation5], %s1757_s25 }
  0x11   : > { %s1574_s9 = scalar_lea.hbm %s1766_s30, 256  ;;  %s1579_s12 = scalar_lea.hbm %s2757_s0, 512 }
  0x12   : > { %p1575_p10 = scmp.ne.s32.totalorder %s1766_s30, %s1574_s9  ;;  %p1576_p11 = pneg %p1772_p8 }
  0x13   : > { %p1580_p0 = scmp.lt.u32.totalorder %s1766_s30, %s2757_s0  ;;  %p1581_p1 = scmp.lt.u32.totalorder %s1579_s12, %s1574_s9 }
  0x14   : > { %p1577_p12 = pnand %p1576_p11, %p1575_p10  ;;  %p1583_p3 = scmp.lt.u32.totalorder %s1574_s9, %s1766_s30 }
  0x15   : > { %p1582_p2 = por %p1581_p1, %p1580_p0 }
  0x16   : > { %p1578_p13 = pneg %p1577_p12 }
  0x17   : > { %p1584_p4 = por %p1583_p3, %p1582_p2 }
  0x19   : > { %p1585_p5 = pnand %p1584_p4, %p1578_p13 }
  0x1b   : > { %1588 = shalt.err (!%p1585_p5)
}
  0x1c   : > { %s1589_s15 = scalar_lea.vmem %s1770_s6, 256  ;;  %s1674_s21 = smov [#allocation4]  }
  0x1d   : > { %p1590_p6 = scmp.ne.s32.totalorder %s1770_s6, %s1589_s15  ;;  %s1594_s22 = sshll.u32 %s1674_s21, 4  ;;  %s1595_s22 = int_to_ptr.vmem [resolvable:$false] %s1594_s22 }
  0x1e   : > { %s1596_s28 = scalar_lea.vmem %s1595_s22, 512  ;;  %p1597_p9 = scmp.lt.s32.totalorder %s1770_s6, %s1595_s22 }
  0x1f   : > { %p1592_p10 = pnand %p1590_p6, %p1576_p11  ;;  %p1598_p0 = scmp.lt.s32.totalorder %s1596_s28, %s1589_s15 }
  0x21   : > { %p1593_p12 = pneg %p1592_p10  ;;  %p1599_p1 = por %p1598_p0, %p1597_p9 }
  0x23   : > { %p1600_p2 = pnand %p1599_p1, %p1593_p12 }
  0x25   : > { %1603 = shalt.err (!%p1600_p2)
}
  0x26   : > { %s1675_s29 = smov 128   ;;  %s1676_s5 = smov 8  }
  0x27   : > { %1518 = dma.hbm_to_vmem [thread:$0]  (!%p1772_p8), %s1766_s30, 256, %s1770_s6, %s170_s8, %s1675_s29, %s1675_s29, %s1676_s5  }
  0x28   : > { %p209_p9 = scmp.lt.s32.totalorder %s1672_s18, 3  ;;  %s1814_s11 = scalar_lea.hbm %s2758_s1, %s1503_s27 }
  0x29   : > { %p2769_p13 = scmp.ge.s32.totalorder %s1672_s18, 1  ;;  %s194_s13 = scalar_lea.vmem [#allocation6], %s1492_s26 }
  0x2a   : > { %s201_s14 = sshll.u32 %s194_s13, 4  ;;  %s191_s30 = scalar_lea.sflag [#allocation7], %s1757_s25  ;;  %s1824_s14 = int_to_ptr.vmem [resolvable:$true] %s201_s14 }
  0x2b   : > { %p1818_p3 = pnand %p2769_p13, %p209_p9  ;;  %s1604_s6 = scalar_lea.hbm %s1814_s11, 256 }
  0x2c   : > { %p1605_p4 = scmp.ne.s32.totalorder %s1814_s11, %s1604_s6  ;;  %s1609_s8 = scalar_lea.hbm %s2758_s1, 512 }
  0x2d   : > { %p1610_p10 = scmp.lt.u32.totalorder %s1814_s11, %s2758_s1  ;;  %p1611_p12 = scmp.lt.u32.totalorder %s1609_s8, %s1604_s6 }
  0x2e   : > { %p1607_p5 = pnand %p1605_p4, %p1576_p11  ;;  %p1613_p1 = scmp.lt.u32.totalorder %s1604_s6, %s1814_s11 }
  0x2f   : > { %p1612_p0 = por %p1611_p12, %p1610_p10 }
  0x30   : > { %p1608_p6 = pneg %p1607_p5 }
  0x31   : > { %p1614_p2 = por %p1613_p1, %p1612_p0 }
  0x33   : > { %p1615_p9 = pnand %p1614_p2, %p1608_p6 }
  0x35   : > { %1618 = shalt.err (!%p1615_p9)
}
  0x36   : > { %s1619_s26 = scalar_lea.vmem %s1824_s14, 256  ;;  %s1677_s22 = smov [#allocation6]  }
  0x37   : > { %p1620_p13 = scmp.ne.s32.totalorder %s1824_s14, %s1619_s26  ;;  %s1624_s28 = sshll.u32 %s1677_s22, 4  ;;  %s1625_s28 = int_to_ptr.vmem [resolvable:$false] %s1624_s28 }
  0x38   : > { %s1626_s9 = scalar_lea.vmem %s1625_s28, 512  ;;  %p1627_p7 = scmp.lt.s32.totalorder %s1824_s14, %s1625_s28 }
  0x39   : > { %p1622_p4 = pnand %p1620_p13, %p1576_p11  ;;  %p1628_p10 = scmp.lt.s32.totalorder %s1626_s9, %s1619_s26 }
  0x3b   : > { %p1623_p5 = pneg %p1622_p4  ;;  %p1629_p12 = por %p1628_p10, %p1627_p7 }
  0x3d   : > { %p1630_p0 = pnand %p1629_p12, %p1623_p5 }
  0x3f   : > { %1633 = shalt.err (!%p1630_p0)
}
  0x40   : > { %1521 = dma.hbm_to_vmem [thread:$0]  (!%p1772_p8), %s1814_s11, 256, %s1824_s14, %s191_s30, %s1675_s29, %s1675_s29, %s1676_s5  }
  0x41   : > { %213 = sbr.rel (%p1818_p3) target bundleno = 787 (0x313), region = 28  ;;  %s215_s10 = sand.u32 (!%p1818_p3), 1, %s1664_s16  }
  0x42   : > { %s1499_s13 = sshll.u32 (!%p1818_p3), %s215_s10, 4  ;;  %s216_s6 = scalar_lea.sflag (!%p1818_p3), [#allocation5], %s215_s10 }
  0x43   : > { %s219_s18 = scalar_lea.vmem (!%p1818_p3), [#allocation4], %s1499_s13  ;;  %p2771_p7 = scmp.ne.s32.totalorder (!%p1818_p3), %s2767_s24, 0 }
  0x48   : > { %1651 = dma.done.wait (%p2771_p7), %s216_s6, 256  }
  0x49   : > { %1653 = vsyncadd (%p2771_p7), %s216_s6, 4294967040  ;;  %s225_s7 = scalar_lea.sflag [#allocation7], %s215_s10  ;;  %s228_s25 = scalar_lea.vmem [#allocation6], %s1499_s13 }
  0x4a   : > { %1655 = dma.done.wait (%p2771_p7), %s225_s7, 256  }
  0x4b   : > { %1657 = vsyncadd (%p2771_p7), %s225_s7, 4294967040  ;;  %vm275_vm0 = vcmask 211968   ;;  %vm279_vm1 = vcmask 205824   ;;  %v1678_v0 = vmov 0.0   ;;  %v273_v1 = vld [vmem:[%s228_s25] sm:$0xff]  ;;  %s1679_s29 = smov 5  }
  0x4c   : > { %280 = vst.msk [vmem:[#allocation2 + $0x18] sm:$0x3] %vm279_vm1, %v1678_v0  ;;  %284 = vst.msk [vmem:[#allocation3 + $0x18] sm:$0x3] %vm279_vm1, %v1678_v0  ;;  %v271_v2 = vld [vmem:[%s219_s18] sm:$0xff]  ;;  %298 = vrot.lane.b32.xlu1 %v273_v1, %s1679_s29  ;;  %v274_v3 = vld [vmem:[%s228_s25 + $0x8] sm:$0xff] }
  0x4d   : > { %281 = vst.msk [vmem:[#allocation3] sm:$0xff] %vm275_vm0, %v1678_v0  ;;  %282 = vst.msk [vmem:[#allocation3 + $0x8] sm:$0xff] %vm275_vm0, %v1678_v0  ;;  %287 = vrot.lane.b32.xlu0 %v271_v2, %s1679_s29  ;;  %v272_v4 = vld [vmem:[%s219_s18 + $0x8] sm:$0xff]  ;;  %vm293_vm2 = vcmask 171048   ;;  %vm317_vm3 = vcmask 1046528   ;;  %vm337_vm4 = vcmask 1044480  }
  0x4e   : > { %276 = vst.msk [vmem:[#allocation2] sm:$0xff] %vm275_vm0, %v1678_v0  ;;  %277 = vst.msk [vmem:[#allocation2 + $0x8] sm:$0xff] %vm275_vm0, %v1678_v0  ;;  %vm347_vm5 = vcmask 1043456   ;;  %vm357_vm6 = vcmask 1042432   ;;  %vm367_vm7 = vcmask 1041408   ;;  %vm327_vm8 = vcmask 1045504  }
  0x4f   : > { %278 = vst.msk [vmem:[#allocation2 + $0x10] sm:$0xff] %vm275_vm0, %v1678_v0  ;;  %283 = vst.msk [vmem:[#allocation3 + $0x10] sm:$0xff] %vm275_vm0, %v1678_v0  ;;  %vm377_vm9 = vcmask 1040384   ;;  %s1680_s24 = smov 126   ;;  %s1681_s5 = smov 127   ;;  %vm1186_vm10 = vcmask 130048  }
  0x50   : > { %300 = vrot.lane.b32.xlu1 %v274_v3, %s1679_s29  ;;  %s1682_s11 = smov 2   ;;  %s1683_s12 = smov 125   ;;  %vm1351_vm11 = vcmask 0  }
  0x51   : > { %289 = vrot.lane.b32.xlu0 %v272_v4, %s1679_s29  ;;  %s1684_s14 = smov 124   ;;  %s1685_s30 = smov 123  }
  0x52   : > { %s1686_s27 = smov 122   ;;  %s1687_s8 = smov 121  }
  0x53   : > { %v1866_v5 = vld [vmem:[#allocation2 + $0x18] sm:$0x3]  ;;  %s1688_s15 = smov 119   ;;  %s1689_s21 = smov 120  }
  0x54   : > { %v1868_v6 = vld [vmem:[#allocation3 + $0x18] sm:$0x3]  ;;  %v1876_v10 = vmul.f32 %v1866_v5, %v1866_v5  ;;  %v390_v14 = vrot.slane %v1866_v5, 1  ;;  %v395_v15 = vrot.slane %v1866_v5, 2  ;;  %s1690_s26 = smov 118   ;;  %p262_p8 = scmp.lt.s32.totalorder %s1735_s19, 1 }
  0x55   : > { %v1872_v7 = vmul.f32 %v1868_v6, %v1866_v5  ;;  %v1880_v13 = vmul.f32 %v1868_v6, %v1868_v6 }
  0x56   : > { %s2806_s19 = smov (!%p262_p8, %s1735_s19), 1 }
  0x57   : > { %s264_s9 = scalar_lea.vmem %s2759_s2, %s2806_s19  ;;  %s267_s18 = scalar_lea.vmem %s2760_s3, %s2806_s19 }
  0xbe   : > { %v299_v8 = vpop.permute.xlu1 %298 }
  0xbf   : > { %v288_v9 = vpop.permute.xlu0 %287  ;;  %304 = vst.msk [vmem:[#allocation3 + $0x5] sm:$0xff] %vm293_vm2, %v299_v8 }
  0xc0   : > { %294 = vst.msk [vmem:[#allocation2 + $0x5] sm:$0xff] %vm293_vm2, %v288_v9 }
  0xc2   : > { %v301_v11 = vpop.permute.xlu1 %300 }
  0xc3   : > { %v290_v12 = vpop.permute.xlu0 %289  ;;  %305 = vst.msk [vmem:[#allocation3 + $0xd] sm:$0xff] %vm293_vm2, %v301_v11 }
  0xc4   : > { %295 = vst.msk [vmem:[#allocation2 + $0xd] sm:$0xff] %vm293_vm2, %v290_v12 }
  0xc6   : > { %v1887_v19 = vld [vmem:[#allocation3] sm:$0xff] }
  0xc7   : > { %v1889_v20 = vld [vmem:[#allocation2] sm:$0xff]  ;;  %v487_v25 = vrot.slane %v1887_v19, 1  ;;  %v1905_v33 = vmul.f32 %v1887_v19, %v1887_v19 }
  0xc8   : > { %v318_v34 = vrot.slane %v1889_v20, 1  ;;  %v328_v35 = vrot.slane %v1889_v20, 2  ;;  %v338_v36 = vrot.slane %v1889_v20, 3  ;;  %v1920_v43 = vmul.f32 %v1889_v20, %v1889_v20 }
  0xc9   : > { %v1924_v44 = vmul.f32 %v1887_v19, %v1889_v20  ;;  %v1199_v28 = vsub.f32 %v1889_v20, %v1887_v19 }
  0xca   : > { %v1914_v41 = vld [vmem:[#allocation3 + $0x8] sm:$0xff]  ;;  %v1916_v42 = vld [vmem:[#allocation3 + $0x10] sm:$0xff] }
  0xcb   : > { %v2765_v45 = vrot.slane %v1914_v41, 1  ;;  %v2764_v46 = vrot.slane %v1914_v41, 3  ;;  %v508_v48 = vrot.slane %v1916_v42, 3  ;;  %v2763_v49 = vrot.slane %v1914_v41, 4  ;;  %v1932_v51 = vld [vmem:[#allocation2 + $0x8] sm:$0xff]  ;;  %v1934_v52 = vld [vmem:[#allocation2 + $0x10] sm:$0xff] }
  0xcc   : > { %v517_v50 = vrot.slane %v1916_v42, 4  ;;  %v1957_v60 = vmul.f32 %v1914_v41, %v1914_v41  ;;  %v1961_v61 = vmul.f32 %v1916_v42, %v1916_v42  ;;  %v319_v62 = vrot.slane %v1932_v51, 1 }
  0xcd   : > { %v1939_v53 = vsel %vm317_vm3, %v487_v25, %v2765_v45  ;;  %v1947_v57 = vsel %vm337_vm4, %v2764_v46, %v508_v48  ;;  %v339_v63 = vrot.slane %v1932_v51, 3  ;;  %v341_v0 = vrot.slane %v1934_v52, 3 }
  0xce   : > { %v1952_v58 = vsel %vm347_vm5, %v2763_v49, %v517_v50  ;;  %v349_v1 = vrot.slane %v1932_v51, 4  ;;  %v351_v2 = vrot.slane %v1934_v52, 4  ;;  %v2766_v3 = vrot.slane %v1932_v51, 5 }
  0xcf   : > { %v361_v4 = vrot.slane %v1934_v52, 5  ;;  %v1971_v8 = vsel %vm317_vm3, %v318_v34, %v319_v62  ;;  %v329_v9 = vrot.slane %v1932_v51, 2  ;;  %v1977_v11 = vsel %vm337_vm4, %v339_v63, %v341_v0 }
  0xd0   : > { %v371_v12 = vrot.slane %v1934_v52, 6  ;;  %v1983_v25 = vsel %vm347_vm5, %v349_v1, %v351_v2  ;;  %v381_v48 = vrot.slane %v1934_v52, 7  ;;  %v1988_v34 = vmul.f32 %v1932_v51, %v1932_v51 }
  0xd1   : > { %v1992_v50 = vmul.f32 %v1914_v41, %v1932_v51  ;;  %v1996_v0 = vmul.f32 %v1916_v42, %v1934_v52  ;;  %v1200_v2 = vsub.f32 %v1932_v51, %v1914_v41  ;;  %v1201_v24 = vsub.f32 %v1934_v52, %v1916_v42 }
  0xd2   : > { %v2006_v23 = vmul.f32 %v1934_v52, %v1934_v52  ;;  %v321_v22 = vrot.slane %v1934_v52, 1  ;;  %v331_v17 = vrot.slane %v1934_v52, 2  ;;  %v2013_v21 = vsel %vm357_vm6, %v2766_v3, %v361_v4 }
  0xd3   : > { %v1233_v18 = vrot.slane %v1199_v28, 6  ;;  %v1234_v32 = vrot.slane %v1200_v2, 6  ;;  %v1236_v31 = vrot.slane %v1201_v24, 6  ;;  %v1204_v30 = vmul.f32 2.0, %v1201_v24 }
  0xd4   : > { %v1225_v29 = vrot.slane %v1201_v24, 2  ;;  %v1203_v49 = vmul.f32 2.0, %v1200_v2  ;;  %v1223_v27 = vrot.slane %v1200_v2, 2  ;;  %v1202_v46 = vmul.f32 2.0, %v1199_v28 }
  0xd5   : > { %v2015_v26 = vsub.f32 %v1199_v28, %v1233_v18  ;;  %v1237_v59 = vsel %vm367_vm7, %v1234_v32, %v1236_v31  ;;  %v1235_v16 = vsel %vm367_vm7, %v1233_v18, %v1234_v32  ;;  %v1211_v56 = vrot.slane %v1204_v30, 1 }
  0xd6   : > { %v2019_v54 = vsub.f32 %v1201_v24, %v1237_v59  ;;  %v2021_v4 = vsub.f32 %v1200_v2, %v1235_v16  ;;  %v1209_v55 = vrot.slane %v1203_v49, 1  ;;  %v369_v47 = vrot.slane %v1932_v51, 6 }
  0xd7   : > { %1280 = vrot.lane.b32.xlu1 %v2015_v26, %s1680_s24  ;;  %v1259_v45 = vmul.f32 2.0, %v2015_v26  ;;  %v1218_v40 = vadd.f32 %v1211_v56, %v1201_v24  ;;  %v1226_v39 = vsel %vm327_vm8, %v1223_v27, %v1225_v29  ;;  %v1208_v31 = vrot.slane %v1202_v46, 1 }
  0xd8   : > { %1282 = vrot.lane.b32.xlu0 %v2021_v4, %s1680_s24  ;;  %v1260_v18 = vmul.f32 2.0, %v2021_v4  ;;  %v1212_v16 = vsel %vm317_vm3, %v1209_v55, %v1211_v56  ;;  %v1222_v30 = vrot.slane %v1199_v28, 2  ;;  %v2033_v32 = vsel %vm317_vm3, %v319_v62, %v321_v22 }
  0xd9   : > { %v1261_v49 = vmul.f32 2.0, %v2019_v54  ;;  %v2036_v59 = vadd.f32 %v1225_v29, %v1218_v40  ;;  %v1217_v38 = vadd.f32 %v1212_v16, %v1200_v2  ;;  %v1210_v24 = vsel %vm317_vm3, %v1208_v31, %v1209_v55 }
  0xda   : > { %v1216_v3 = vadd.f32 %v1210_v24, %v1199_v28  ;;  %v1224_v46 = vsel %vm327_vm8, %v1222_v30, %v1223_v27  ;;  %v326_v37 = vadd.f32 %v2033_v32, %v1932_v51  ;;  %v2045_v56 = vsel %vm327_vm8, %v329_v9, %v331_v17 }
  0xdb   : > { %1284 = vrot.lane.b32.xlu1 %v2019_v54, %s1680_s24  ;;  %v2049_v62 = vadd.f32 %v1226_v39, %v1217_v38  ;;  %v372_v29 = vsel %vm367_vm7, %v369_v47, %v371_v12  ;;  %v379_v40 = vrot.slane %v1932_v51, 7  ;;  %v2056_v27 = vsel %vm317_vm3, %v321_v22, %v390_v14 }
  0xdc   : > { %1267 = vrot.lane.b32.xlu0 %v1260_v18, %s1681_s5  ;;  %v2059_v28 = vadd.f32 %v1224_v46, %v1216_v3  ;;  %v336_v55 = vadd.f32 %v2045_v56, %v326_v37  ;;  %v2065_v38 = vsel %vm327_vm8, %v331_v17, %v395_v15  ;;  %v325_v39 = vadd.f32 %v1971_v8, %v1889_v20 }
  0xdd   : > { %v382_v12 = vsel %vm377_vm9, %v379_v40, %v381_v48  ;;  %v330_v14 = vsel %vm327_vm8, %v328_v35, %v329_v9  ;;  %v340_v5 = vsel %vm337_vm4, %v338_v36, %v339_v63  ;;  %v2772_v15 = vrot.slane %v1889_v20, 4 }
  0xde   : > { %v346_v22 = vadd.f32 %v1977_v11, %v336_v55  ;;  %v335_v37 = vadd.f32 %v330_v14, %v325_v39  ;;  %v2773_v3 = vrot.slane %v1932_v51, 5  ;;  %v2774_v8 = vrot.slane %v1889_v20, 5 }
  0xdf   : > { %v350_v17 = vsel %vm347_vm5, %v2772_v15, %v349_v1  ;;  %v2775_v9 = vrot.slane %v1889_v20, 6  ;;  %1265 = vrot.lane.b32.xlu1 %v1259_v45, %s1681_s5  ;;  %v2776_v36 = vrot.slane %v1889_v20, 7  ;;  %v490_v1 = vrot.slane %v1916_v42, 1 }
  0xe0   : > { %v360_v35 = vsel %vm357_vm6, %v2774_v8, %v2773_v3  ;;  %v499_v11 = vrot.slane %v1916_v42, 2  ;;  %v533_v2 = vrot.slane %v1914_v41, 6  ;;  %1251 = vrot.lane.b32.xlu0 %v2036_v59, %s1682_s11  ;;  %v356_v31 = vadd.f32 %v1983_v25, %v346_v22 }
  0xe1   : > { %v370_v48 = vsel %vm367_vm7, %v2775_v9, %v369_v47  ;;  %v380_v63 = vsel %vm377_vm9, %v2776_v36, %v379_v40  ;;  %v345_v18 = vadd.f32 %v340_v5, %v335_v37  ;;  %v542_v47 = vrot.slane %v1914_v41, 7 }
  0xe2   : > { %v494_v20 = vadd.f32 %v1939_v53, %v1887_v19  ;;  %v2777_v45 = vrot.slane %v1914_v41, 1  ;;  %v2778_v30 = vrot.slane %v1914_v41, 2  ;;  %v2779_v25 = vrot.slane %v1916_v42, 5 }
  0xe3   : > { %v2780_v46 = vrot.slane %v1914_v41, 5  ;;  %v2781_v53 = vrot.slane %v1916_v42, 6  ;;  %v366_v39 = vadd.f32 %v2013_v21, %v356_v31  ;;  %v355_v14 = vadd.f32 %v350_v17, %v345_v18  ;;  %1269 = vrot.lane.b32.xlu1 %v1261_v49, %s1681_s5 }
  0xe4   : > { %v2110_v16 = vsel %vm317_vm3, %v2777_v45, %v490_v1  ;;  %v2117_v24 = vsel %vm327_vm8, %v2778_v30, %v499_v11  ;;  %v2782_v15 = vrot.slane %v1868_v6, 1  ;;  %v2783_v37 = vrot.slane %v1916_v42, 7  ;;  %1247 = vrot.lane.b32.xlu0 %v2059_v28, %s1682_s11 }
  0xe5   : > { %v527_v40 = vsel %vm357_vm6, %v2780_v46, %v2779_v25  ;;  %v536_v55 = vsel %vm367_vm7, %v533_v2, %v2781_v53  ;;  %v495_v5 = vadd.f32 %v2110_v16, %v1914_v41  ;;  %v2784_v8 = vmov %v2778_v30 }
  0xe6   : > { %v2133_v22 = vsel %vm317_vm3, %v490_v1, %v2782_v15  ;;  %v545_v3 = vsel %vm377_vm9, %v542_v47, %v2783_v37  ;;  %v2785_v9 = vrot.slane %v1887_v19, 2  ;;  %v2786_v17 = vrot.slane %v1914_v41, 3 }
  0xe7   : > { %v2787_v36 = vrot.slane %v1887_v19, 3  ;;  %v2788_v1 = vrot.slane %v1914_v41, 4  ;;  %v2789_v49 = vrot.slane %v1887_v19, 4  ;;  %v376_v45 = vadd.f32 %v372_v29, %v366_v39  ;;  %1249 = vrot.lane.b32.xlu1 %v2049_v62, %s1682_s11 }
  0xe8   : > { %v498_v21 = vsel %vm327_vm8, %v2785_v9, %v2784_v8  ;;  %v365_v30 = vadd.f32 %v360_v35, %v355_v14  ;;  %v504_v25 = vadd.f32 %v2117_v24, %v495_v5  ;;  %v2790_v53 = vrot.slane %v1914_v41, 5 }
  0xe9   : > { %v507_v31 = vsel %vm337_vm4, %v2787_v36, %v2786_v17  ;;  %v516_v18 = vsel %vm347_vm5, %v2789_v49, %v2788_v1  ;;  %v503_v46 = vadd.f32 %v498_v21, %v494_v20  ;;  %v2791_v15 = vrot.slane %v1887_v19, 5 }
  0xea   : > { %v2792_v8 = vrot.slane %v1887_v19, 6  ;;  %v2793_v17 = vrot.slane %v1887_v19, 7  ;;  %v655_v29 = vrot.slane %v1988_v34, 1  ;;  %v386_v35 = vadd.f32 %v382_v12, %v376_v45 }
  0xeb   : > { %v525_v37 = vsel %vm357_vm6, %v2791_v15, %v2790_v53  ;;  %v375_v39 = vadd.f32 %v370_v48, %v365_v30  ;;  %v513_v20 = vadd.f32 %v1947_v57, %v504_v25  ;;  %v512_v14 = vadd.f32 %v507_v31, %v503_v46 }
  0xec   : > { %v534_v9 = vsel %vm367_vm7, %v2792_v8, %v533_v2  ;;  %v543_v36 = vsel %vm377_vm9, %v2793_v17, %v542_v47  ;;  %v657_v5 = vrot.slane %v2006_v23, 1  ;;  %v664_v21 = vrot.slane %v1988_v34, 2 }
  0xed   : > { %v666_v2 = vrot.slane %v2006_v23, 2  ;;  %v673_v19 = vrot.slane %v1988_v34, 3  ;;  %v388_v47 = vadd.f32 %v386_v35, %v1934_v52  ;;  %v385_v1 = vadd.f32 %v380_v63, %v375_v39 }
  0xee   : > { %v522_v12 = vadd.f32 %v1952_v58, %v513_v20  ;;  %v521_v48 = vadd.f32 %v516_v18, %v512_v14  ;;  %v2181_v57 = vsel %vm317_vm3, %v655_v29, %v657_v5  ;;  %v675_v49 = vrot.slane %v2006_v23, 3 }
  0xef   : > { %v2186_v31 = vsel %vm327_vm8, %v664_v21, %v666_v2  ;;  %v682_v45 = vrot.slane %v1988_v34, 4  ;;  %v394_v52 = vadd.f32 %v2056_v27, %v388_v47  ;;  %v387_v63 = vadd.f32 %v385_v1, %v1932_v51 }
  0xf0   : > { %v531_v58 = vadd.f32 %v527_v40, %v522_v12  ;;  %v530_v18 = vadd.f32 %v525_v37, %v521_v48  ;;  %v662_v30 = vadd.f32 %v2181_v57, %v1988_v34  ;;  %v676_v25 = vsel %vm337_vm4, %v673_v19, %v675_v49 }
  0xf1   : > { %v684_v46 = vrot.slane %v2006_v23, 4  ;;  %v691_v53 = vrot.slane %v1988_v34, 5  ;;  %v2200_v15 = vadd.f32 %v2065_v38, %v394_v52  ;;  %v393_v27 = vadd.f32 %v387_v63, %v2033_v32 }
  0xf2   : > { %v540_v8 = vadd.f32 %v536_v55, %v531_v58  ;;  %v539_v51 = vadd.f32 %v534_v9, %v530_v18  ;;  %v671_v40 = vadd.f32 %v2186_v31, %v662_v30  ;;  %v693_v17 = vrot.slane %v2006_v23, 5 }
  0xf3   : > { %v685_v37 = vsel %vm347_vm5, %v682_v45, %v684_v46  ;;  %v700_v35 = vrot.slane %v1988_v34, 6  ;;  %404 = vrot.lane.b32.xlu1 %v2200_v15, %s1681_s5  ;;  %v2212_v38 = vadd.f32 %v393_v27, %v2045_v56  ;;  %v702_v55 = vrot.slane %v2006_v23, 6 }
  0xf4   : > { %v549_v39 = vadd.f32 %v545_v3, %v540_v8  ;;  %v548_v32 = vadd.f32 %v543_v36, %v539_v51  ;;  %v680_v9 = vadd.f32 %v676_v25, %v671_v40  ;;  %v694_v20 = vsel %vm357_vm6, %v691_v53, %v693_v17 }
  0xf5   : > { %v709_v14 = vrot.slane %v1988_v34, 7  ;;  %v711_v47 = vrot.slane %v2006_v23, 7  ;;  %402 = vrot.lane.b32.xlu0 %v2212_v38, %s1681_s5  ;;  %v703_v3 = vsel %vm367_vm7, %v700_v35, %v702_v55  ;;  %v2794_v36 = vrot.slane %v1876_v10, 1 }
  0xf6   : > { %v551_v1 = vadd.f32 %v549_v39, %v1916_v42  ;;  %v550_v56 = vadd.f32 %v548_v32, %v1914_v41  ;;  %v689_v48 = vadd.f32 %v685_v37, %v680_v9  ;;  %v2795_v52 = vrot.slane %v1876_v10, 2 }
  0xf7   : > { %v721_v12 = vsel %vm317_vm3, %v657_v5, %v2794_v36  ;;  %v712_v49 = vsel %vm377_vm9, %v709_v14, %v711_v47  ;;  %v822_v58 = vrot.slane %v1957_v60, 1  ;;  %412 = vrot.lane.b32.xlu1 %v2200_v15, %s1680_s24  ;;  %v2796_v18 = vrot.slane %v1868_v6, 2 }
  0xf8   : > { %v726_v63 = vsel %vm327_vm8, %v666_v2, %v2795_v52  ;;  %v557_v41 = vadd.f32 %v2133_v22, %v551_v1  ;;  %v824_v30 = vrot.slane %v1961_v61, 1  ;;  %v831_v25 = vrot.slane %v1957_v60, 2 }
  0xf9   : > { %v559_v5 = vsel %vm327_vm8, %v499_v11, %v2796_v18  ;;  %v698_v10 = vadd.f32 %v694_v20, %v689_v48  ;;  %v833_v2 = vrot.slane %v1961_v61, 2  ;;  %v840_v46 = vrot.slane %v1957_v60, 3  ;;  %410 = vrot.lane.b32.xlu0 %v2212_v38, %s1680_s24 }
  0xfa   : > { %v842_v27 = vrot.slane %v1961_v61, 3  ;;  %v2252_v22 = vadd.f32 %v559_v5, %v557_v41  ;;  %v2255_v6 = vadd.f32 %v550_v56, %v2110_v16  ;;  %v2260_v42 = vsel %vm317_vm3, %v822_v58, %v824_v30 }
  0xfb   : > { %v849_v11 = vrot.slane %v1957_v60, 4  ;;  %v707_v8 = vadd.f32 %v703_v3, %v698_v10  ;;  %v829_v51 = vadd.f32 %v2260_v42, %v1957_v60  ;;  %v2268_v40 = vsel %vm327_vm8, %v831_v25, %v833_v2  ;;  %420 = vrot.lane.b32.xlu1 %v2200_v15, %s1683_s12 }
  0xfc   : > { %v843_v16 = vsel %vm337_vm4, %v840_v46, %v842_v27  ;;  %v851_v37 = vrot.slane %v1961_v61, 4  ;;  %v858_v17 = vrot.slane %v1957_v60, 5  ;;  %v860_v39 = vrot.slane %v1961_v61, 5 }
  0xfd   : > { %v867_v32 = vrot.slane %v1957_v60, 6  ;;  %v716_v55 = vadd.f32 %v712_v49, %v707_v8  ;;  %v838_v9 = vadd.f32 %v2268_v40, %v829_v51  ;;  %v869_v20 = vrot.slane %v1961_v61, 6  ;;  %418 = vrot.lane.b32.xlu0 %v2212_v38, %s1683_s12 }
  0xfe   : > { %v876_v47 = vrot.slane %v1957_v60, 7  ;;  %v852_v1 = vsel %vm347_vm5, %v849_v11, %v851_v37  ;;  %v861_v56 = vsel %vm357_vm6, %v858_v17, %v860_v39  ;;  %v878_v3 = vrot.slane %v1961_v61, 7 }
  0xff   : > { %v2797_v36 = vrot.slane %v1880_v13, 1  ;;  %v718_v49 = vadd.f32 %v716_v55, %v2006_v23  ;;  %v847_v52 = vadd.f32 %v843_v16, %v838_v9  ;;  %v870_v41 = vsel %vm367_vm7, %v867_v32, %v869_v20  ;;  %428 = vrot.lane.b32.xlu1 %v2200_v15, %s1684_s14 }
 0x100   : > { %v2798_v18 = vrot.slane %v1880_v13, 2  ;;  %v654_v23 = vrot.slane %v1920_v43, 1  ;;  %v663_v10 = vrot.slane %v1920_v43, 2  ;;  %v672_v27 = vrot.slane %v1920_v43, 3 }
 0x101   : > { %v888_v48 = vsel %vm317_vm3, %v824_v30, %v2797_v36  ;;  %v879_v30 = vsel %vm377_vm9, %v876_v47, %v878_v3  ;;  %v724_v8 = vadd.f32 %v721_v12, %v718_v49  ;;  %v856_v51 = vadd.f32 %v852_v1, %v847_v52  ;;  %426 = vrot.lane.b32.xlu0 %v2212_v38, %s1684_s14 }
 0x102   : > { %v2299_v5 = vsel %vm327_vm8, %v833_v2, %v2798_v18  ;;  %v681_v13 = vrot.slane %v1920_v43, 4  ;;  %v690_v2 = vrot.slane %v1920_v43, 5  ;;  %v656_v16 = vsel %vm317_vm3, %v654_v23, %v655_v29 }
 0x103   : > { %v665_v37 = vsel %vm327_vm8, %v663_v10, %v664_v21  ;;  %v674_v12 = vsel %vm337_vm4, %v672_v27, %v673_v19  ;;  %v699_v39 = vrot.slane %v1920_v43, 6  ;;  %v2323_v55 = vadd.f32 %v726_v63, %v724_v8  ;;  %436 = vrot.lane.b32.xlu1 %v2200_v15, %s1685_s30 }
 0x104   : > { %v865_v9 = vadd.f32 %v861_v56, %v856_v51  ;;  %v661_v20 = vadd.f32 %v656_v16, %v1920_v43  ;;  %v683_v1 = vsel %vm347_vm5, %v681_v13, %v682_v45  ;;  %v692_v29 = vsel %vm357_vm6, %v690_v2, %v691_v53 }
 0x105   : > { %v701_v21 = vsel %vm367_vm7, %v699_v39, %v700_v35  ;;  %v708_v19 = vrot.slane %v1920_v43, 7  ;;  %v821_v63 = vrot.slane %v1905_v33, 1  ;;  %v830_v45 = vrot.slane %v1905_v33, 2  ;;  %434 = vrot.lane.b32.xlu0 %v2212_v38, %s1685_s30 }
 0x106   : > { %v874_v56 = vadd.f32 %v870_v41, %v865_v9  ;;  %v670_v3 = vadd.f32 %v665_v37, %v661_v20  ;;  %v839_v36 = vrot.slane %v1905_v33, 3  ;;  %v848_v43 = vrot.slane %v1905_v33, 4 }
 0x107   : > { %v710_v53 = vsel %vm377_vm9, %v708_v19, %v709_v14  ;;  %v823_v35 = vsel %vm317_vm3, %v821_v63, %v822_v58  ;;  %v857_v49 = vrot.slane %v1905_v33, 5  ;;  %v832_v23 = vsel %vm327_vm8, %v830_v45, %v831_v25  ;;  %444 = vrot.lane.b32.xlu1 %v2200_v15, %s1686_s27 }
 0x108   : > { %v883_v52 = vadd.f32 %v879_v30, %v874_v56  ;;  %v679_v41 = vadd.f32 %v674_v12, %v670_v3  ;;  %v828_v18 = vadd.f32 %v823_v35, %v1905_v33  ;;  %v841_v14 = vsel %vm337_vm4, %v839_v36, %v840_v46 }
 0x109   : > { %v850_v58 = vsel %vm347_vm5, %v848_v43, %v849_v11  ;;  %v859_v30 = vsel %vm357_vm6, %v857_v49, %v858_v17  ;;  %v866_v10 = vrot.slane %v1905_v33, 6  ;;  %v875_v51 = vrot.slane %v1905_v33, 7  ;;  %442 = vrot.lane.b32.xlu0 %v2212_v38, %s1686_s27 }
 0x10a   : > { %v885_v27 = vadd.f32 %v883_v52, %v1961_v61  ;;  %v688_v8 = vadd.f32 %v683_v1, %v679_v41  ;;  %v837_v25 = vadd.f32 %v832_v23, %v828_v18  ;;  %v989_v13 = vrot.slane %v1992_v50, 1 }
 0x10b   : > { %v868_v46 = vsel %vm367_vm7, %v866_v10, %v867_v32  ;;  %v991_v11 = vrot.slane %v1996_v0, 1  ;;  %v998_v17 = vrot.slane %v1992_v50, 2  ;;  %v877_v33 = vsel %vm377_vm9, %v875_v51, %v876_v47  ;;  %452 = vrot.lane.b32.xlu1 %v2200_v15, %s1687_s8 }
 0x10c   : > { %v891_v2 = vadd.f32 %v888_v48, %v885_v27  ;;  %v697_v16 = vadd.f32 %v692_v29, %v688_v8  ;;  %v846_v61 = vadd.f32 %v841_v14, %v837_v25  ;;  %v1000_v32 = vrot.slane %v1996_v0, 2 }
 0x10d   : > { %v2381_v37 = vsel %vm317_vm3, %v989_v13, %v991_v11  ;;  %v1007_v12 = vrot.slane %v1992_v50, 3  ;;  %v1009_v39 = vrot.slane %v1996_v0, 3  ;;  %450 = vrot.lane.b32.xlu0 %v2212_v38, %s1687_s8  ;;  %v1016_v19 = vrot.slane %v1992_v50, 4 }
 0x10e   : > { %v2387_v48 = vadd.f32 %v2299_v5, %v891_v2  ;;  %v706_v9 = vadd.f32 %v701_v21, %v697_v16  ;;  %v855_v20 = vadd.f32 %v850_v58, %v846_v61  ;;  %v996_v47 = vadd.f32 %v2381_v37, %v1992_v50 }
 0x10f   : > { %v2394_v1 = vsel %vm327_vm8, %v998_v17, %v1000_v32  ;;  %v1010_v29 = vsel %vm337_vm4, %v1007_v12, %v1009_v39  ;;  %v1018_v63 = vrot.slane %v1996_v0, 4  ;;  %v1025_v3 = vrot.slane %v1992_v50, 5  ;;  %466 = vrot.lane.b32.xlu1 %v2212_v38, %s1688_s15 }
 0x110   : > { %v715_v56 = vadd.f32 %v710_v53, %v706_v9  ;;  %v864_v5 = vadd.f32 %v859_v30, %v855_v20  ;;  %v1005_v21 = vadd.f32 %v2394_v1, %v996_v47  ;;  %v1027_v36 = vrot.slane %v1996_v0, 5 }
 0x111   : > { %v1019_v45 = vsel %vm347_vm5, %v1016_v19, %v1018_v63  ;;  %v1034_v35 = vrot.slane %v1992_v50, 6  ;;  %v1036_v43 = vrot.slane %v1996_v0, 6  ;;  %v1043_v41 = vrot.slane %v1992_v50, 7  ;;  %458 = vrot.lane.b32.xlu0 %v2212_v38, %s1689_s21 }
 0x112   : > { %v717_v49 = vadd.f32 %v715_v56, %v1988_v34  ;;  %v873_v53 = vadd.f32 %v868_v46, %v864_v5  ;;  %v1014_v52 = vadd.f32 %v1010_v29, %v1005_v21  ;;  %v1028_v18 = vsel %vm357_vm6, %v1025_v3, %v1027_v36 }
 0x113   : > { %v1037_v23 = vsel %vm367_vm7, %v1034_v35, %v1036_v43  ;;  %v1045_v14 = vrot.slane %v1996_v0, 7  ;;  %v2799_v58 = vrot.slane %v1872_v7, 1  ;;  %v2800_v8 = vrot.slane %v1872_v7, 2  ;;  %567 = vrot.lane.b32.xlu1 %v2252_v22, %s1681_s5 }
 0x114   : > { %v723_v34 = vadd.f32 %v717_v49, %v2181_v57  ;;  %v882_v10 = vadd.f32 %v877_v33, %v873_v53  ;;  %v1023_v27 = vadd.f32 %v1019_v45, %v1014_v52  ;;  %v988_v46 = vrot.slane %v1924_v44, 1 }
 0x115   : > { %v1055_v30 = vsel %vm317_vm3, %v991_v11, %v2799_v58  ;;  %v1060_v25 = vsel %vm327_vm8, %v1000_v32, %v2800_v8  ;;  %v1046_v51 = vsel %vm377_vm9, %v1043_v41, %v1045_v14  ;;  %v997_v2 = vrot.slane %v1924_v44, 2  ;;  %460 = vrot.lane.b32.xlu0 %v2200_v15, %s1689_s21 }
 0x116   : > { %v1006_v16 = vrot.slane %v1924_v44, 3  ;;  %v2428_v11 = vadd.f32 %v723_v34, %v2186_v31  ;;  %v884_v57 = vadd.f32 %v882_v10, %v1957_v60  ;;  %v1032_v61 = vadd.f32 %v1028_v18, %v1023_v27 }
 0x117   : > { %v1015_v7 = vrot.slane %v1924_v44, 4  ;;  %v990_v33 = vsel %vm317_vm3, %v988_v46, %v989_v13  ;;  %v999_v32 = vsel %vm327_vm8, %v997_v2, %v998_v17  ;;  %v1024_v9 = vrot.slane %v1924_v44, 5  ;;  %575 = vrot.lane.b32.xlu1 %v2252_v22, %s1680_s24 }
 0x118   : > { %v1008_v39 = vsel %vm337_vm4, %v1006_v16, %v1007_v12  ;;  %v890_v20 = vadd.f32 %v884_v57, %v2260_v42  ;;  %v1041_v31 = vadd.f32 %v1037_v23, %v1032_v61  ;;  %v995_v47 = vadd.f32 %v990_v33, %v1924_v44 }
 0x119   : > { %v1017_v60 = vsel %vm347_vm5, %v1015_v7, %v1016_v19  ;;  %v2445_v29 = vadd.f32 %v2255_v6, %v2117_v24  ;;  %v1026_v13 = vsel %vm357_vm6, %v1024_v9, %v1025_v3  ;;  %v1033_v17 = vrot.slane %v1924_v44, 6 }
 0x11a   : > { %v1042_v12 = vrot.slane %v1924_v44, 7  ;;  %v2451_v42 = vadd.f32 %v890_v20, %v2268_v40  ;;  %v1050_v63 = vadd.f32 %v1046_v51, %v1041_v31  ;;  %v1004_v56 = vadd.f32 %v999_v32, %v995_v47 }
 0x11b   : > { %565 = vrot.lane.b32.xlu0 %v2445_v29, %s1681_s5  ;;  %v1035_v19 = vsel %vm367_vm7, %v1033_v17, %v1034_v35  ;;  %583 = vrot.lane.b32.xlu1 %v2252_v22, %s1683_s12 }
 0x11c   : > { %v1044_v5 = vsel %vm377_vm9, %v1042_v12, %v1043_v41  ;;  %v1052_v24 = vadd.f32 %v1050_v63, %v1996_v0  ;;  %v1013_v6 = vadd.f32 %v1008_v39, %v1004_v56 }
 0x11e   : > { %v1058_v21 = vadd.f32 %v1055_v30, %v1052_v24  ;;  %v1022_v44 = vadd.f32 %v1017_v60, %v1013_v6 }
 0x11f   : > { %573 = vrot.lane.b32.xlu0 %v2445_v29, %s1680_s24  ;;  %591 = vrot.lane.b32.xlu1 %v2252_v22, %s1684_s14 }
 0x120   : > { %v2462_v40 = vadd.f32 %v1060_v25, %v1058_v21  ;;  %v1031_v3 = vadd.f32 %v1026_v13, %v1022_v44 }
 0x122   : > { %v1040_v45 = vadd.f32 %v1035_v19, %v1031_v3 }
 0x123   : > { %581 = vrot.lane.b32.xlu0 %v2445_v29, %s1683_s12  ;;  %599 = vrot.lane.b32.xlu1 %v2252_v22, %s1685_s30 }
 0x124   : > { %v1049_v0 = vadd.f32 %v1044_v5, %v1040_v45 }
 0x126   : > { %v1051_v36 = vadd.f32 %v1049_v0, %v1992_v50 }
 0x127   : > { %589 = vrot.lane.b32.xlu0 %v2445_v29, %s1684_s14  ;;  %607 = vrot.lane.b32.xlu1 %v2252_v22, %s1686_s27 }
 0x128   : > { %v1057_v35 = vadd.f32 %v1051_v36, %v2381_v37 }
 0x12a   : > { %v2477_v43 = vadd.f32 %v1057_v35, %v2394_v1 }
 0x12b   : > { %597 = vrot.lane.b32.xlu0 %v2445_v29, %s1685_s30  ;;  %615 = vrot.lane.b32.xlu1 %v2252_v22, %s1687_s8 }
 0x12f   : > { %605 = vrot.lane.b32.xlu0 %v2445_v29, %s1686_s27  ;;  %623 = vrot.lane.b32.xlu1 %v2252_v22, %s1689_s21 }
 0x133   : > { %613 = vrot.lane.b32.xlu0 %v2445_v29, %s1687_s8  ;;  %629 = vrot.lane.b32.xlu1 %v2445_v29, %s1688_s15 }
 0x137   : > { %621 = vrot.lane.b32.xlu0 %v2445_v29, %s1689_s21  ;;  %734 = vrot.lane.b32.xlu1 %v2323_v55, %s1681_s5 }
 0x13b   : > { %468 = vrot.lane.b32.xlu0 %v2200_v15, %s1688_s15  ;;  %901 = vrot.lane.b32.xlu1 %v2387_v48, %s1681_s5 }
 0x13f   : > { %732 = vrot.lane.b32.xlu0 %v2428_v11, %s1681_s5  ;;  %742 = vrot.lane.b32.xlu1 %v2323_v55, %s1680_s24 }
 0x143   : > { %899 = vrot.lane.b32.xlu0 %v2451_v42, %s1681_s5  ;;  %909 = vrot.lane.b32.xlu1 %v2387_v48, %s1680_s24 }
 0x147   : > { %740 = vrot.lane.b32.xlu0 %v2428_v11, %s1680_s24  ;;  %750 = vrot.lane.b32.xlu1 %v2323_v55, %s1683_s12 }
 0x149   : > { %v2517_v50 = vpop.permute.xlu1 %1280 }
 0x14a   : > { %v2521_v37 = vpop.permute.xlu0 %1282 }
 0x14b   : > { %907 = vrot.lane.b32.xlu0 %v2451_v42, %s1680_s24  ;;  %917 = vrot.lane.b32.xlu1 %v2387_v48, %s1683_s12 }
 0x14d   : > { %v2525_v1 = vpop.permute.xlu1 %1284 }
 0x14e   : > { %v2531_v49 = vpop.permute.xlu0 %1267 }
 0x14f   : > { %748 = vrot.lane.b32.xlu0 %v2428_v11, %s1683_s12  ;;  %758 = vrot.lane.b32.xlu1 %v2323_v55, %s1684_s14 }
 0x151   : > { %v2533_v53 = vpop.permute.xlu1 %1265 }
 0x152   : > { %v2543_v41 = vpop.permute.xlu0 %1251 }
 0x153   : > { %915 = vrot.lane.b32.xlu0 %v2451_v42, %s1683_s12  ;;  %925 = vrot.lane.b32.xlu1 %v2387_v48, %s1684_s14 }
 0x155   : > { %v2539_v52 = vpop.permute.xlu1 %1269 }
 0x156   : > { %v2553_v23 = vpop.permute.xlu0 %1247 }
 0x157   : > { %756 = vrot.lane.b32.xlu0 %v2428_v11, %s1684_s14  ;;  %766 = vrot.lane.b32.xlu1 %v2323_v55, %s1685_s30 }
 0x159   : > { %v2549_v18 = vpop.permute.xlu1 %1249 }
 0x15b   : > { %923 = vrot.lane.b32.xlu0 %v2451_v42, %s1684_s14  ;;  %933 = vrot.lane.b32.xlu1 %v2387_v48, %s1685_s30 }
 0x15f   : > { %764 = vrot.lane.b32.xlu0 %v2428_v11, %s1685_s30  ;;  %774 = vrot.lane.b32.xlu1 %v2323_v55, %s1686_s27 }
 0x163   : > { %931 = vrot.lane.b32.xlu0 %v2451_v42, %s1685_s30  ;;  %941 = vrot.lane.b32.xlu1 %v2387_v48, %s1686_s27 }
 0x165   : > { %v405_v14 = vpop.permute.xlu1 %404 }
 0x166   : > { %v409_v27 = vadd.f32 %v405_v14, %v2200_v15 }
 0x167   : > { %772 = vrot.lane.b32.xlu0 %v2428_v11, %s1686_s27  ;;  %v403_v58 = vpop.permute.xlu0 %402  ;;  %1068 = vrot.lane.b32.xlu1 %v2462_v40, %s1681_s5 }
 0x168   : > { %v408_v61 = vadd.f32 %v403_v58, %v2212_v38 }
 0x169   : > { %v413_v30 = vpop.permute.xlu1 %412 }
 0x16a   : > { %v417_v25 = vadd.f32 %v413_v30, %v409_v27 }
 0x16b   : > { %939 = vrot.lane.b32.xlu0 %v2451_v42, %s1686_s27  ;;  %v411_v34 = vpop.permute.xlu0 %410  ;;  %782 = vrot.lane.b32.xlu1 %v2323_v55, %s1687_s8 }
 0x16c   : > { %v416_v32 = vadd.f32 %v411_v34, %v408_v61 }
 0x16d   : > { %v421_v10 = vpop.permute.xlu1 %420 }
 0x16e   : > { %v425_v46 = vadd.f32 %v421_v10, %v417_v25 }
 0x16f   : > { %1066 = vrot.lane.b32.xlu0 %v2477_v43, %s1681_s5  ;;  %v419_v8 = vpop.permute.xlu0 %418  ;;  %949 = vrot.lane.b32.xlu1 %v2387_v48, %s1687_s8 }
 0x170   : > { %v424_v9 = vadd.f32 %v419_v8, %v416_v32 }
 0x171   : > { %v429_v51 = vpop.permute.xlu1 %428 }
 0x172   : > { %v433_v16 = vadd.f32 %v429_v51, %v425_v46 }
 0x173   : > { %780 = vrot.lane.b32.xlu0 %v2428_v11, %s1687_s8  ;;  %v427_v2 = vpop.permute.xlu0 %426  ;;  %1076 = vrot.lane.b32.xlu1 %v2462_v40, %s1680_s24 }
 0x174   : > { %v432_v47 = vadd.f32 %v427_v2, %v424_v9 }
 0x175   : > { %v437_v57 = vpop.permute.xlu1 %436 }
 0x176   : > { %v441_v7 = vadd.f32 %v437_v57, %v433_v16 }
 0x177   : > { %947 = vrot.lane.b32.xlu0 %v2451_v42, %s1687_s8  ;;  %v435_v33 = vpop.permute.xlu0 %434  ;;  %788 = vrot.lane.b32.xlu1 %v2428_v11, %s1689_s21 }
 0x178   : > { %v440_v13 = vadd.f32 %v435_v33, %v432_v47 }
 0x179   : > { %v445_v39 = vpop.permute.xlu1 %444 }
 0x17a   : > { %v449_v20 = vadd.f32 %v445_v39, %v441_v7 }
 0x17b   : > { %1074 = vrot.lane.b32.xlu0 %v2477_v43, %s1680_s24  ;;  %v443_v31 = vpop.permute.xlu0 %442  ;;  %955 = vrot.lane.b32.xlu1 %v2451_v42, %s1689_s21  ;;  %s270_s24 = scalar_lea.vmem %s2761_s4, %s2806_s19 }
 0x17c   : > { %v448_v63 = vadd.f32 %v443_v31, %v440_v13 }
 0x17d   : > { %v453_v60 = vpop.permute.xlu1 %452 }
 0x17e   : > { %v457_v17 = vadd.f32 %v453_v60, %v449_v20 }
 0x17f   : > { %631 = vrot.lane.b32.xlu0 %v2252_v22, %s1688_s15  ;;  %v451_v12 = vpop.permute.xlu0 %450  ;;  %1082 = vrot.lane.b32.xlu1 %v2477_v43, %s1683_s12 }
 0x180   : > { %v456_v19 = vadd.f32 %v451_v12, %v448_v63  ;;  %v1274_v63 = vadd.f32 %v2533_v53, %v2015_v26 }
 0x181   : > { %v467_v56 = vpop.permute.xlu1 %466 }
 0x182   : > { %v1289_v53 = vadd.f32 %v2517_v50, %v1274_v63  ;;  %v1276_v50 = vadd.f32 %v2539_v52, %v2019_v54 }
 0x183   : > { %790 = vrot.lane.b32.xlu0 %v2323_v55, %s1689_s21  ;;  %v459_v5 = vpop.permute.xlu0 %458  ;;  %474 = vrot.lane.b32.xlu1 %v2212_v38, %s1690_s26 }
 0x184   : > { %v464_v24 = vadd.f32 %v459_v5, %v456_v19  ;;  %v1256_v19 = vsub.f32 %v2059_v28, %v2553_v23  ;;  %v1291_v54 = vadd.f32 %v2525_v1, %v1276_v50 }
 0x185   : > { %v568_v6 = vpop.permute.xlu1 %567 }
 0x186   : > { %v2593_v21 = vadd.f32 %v467_v56, %v464_v24  ;;  %v572_v3 = vadd.f32 %v568_v6, %v2252_v22  ;;  %v1257_v56 = vsub.f32 %v2049_v62, %v2549_v18  ;;  %v1292_v18 = vand.u32 2147483647, %v1256_v19 }
 0x187   : > { %957 = vrot.lane.b32.xlu0 %v2387_v48, %s1689_s21  ;;  %v461_v44 = vpop.permute.xlu0 %460  ;;  %637 = vrot.lane.b32.xlu1 %v2445_v29, %s1690_s26 }
 0x188   : > { %v465_v45 = vadd.f32 %v461_v44, %v457_v17  ;;  %v1275_v17 = vadd.f32 %v2531_v49, %v2021_v4  ;;  %v1293_v62 = vand.u32 2147483647, %v1257_v56 }
 0x189   : > { %v576_v0 = vpop.permute.xlu1 %575 }
 0x18a   : > { %v580_v36 = vadd.f32 %v576_v0, %v572_v3  ;;  %v1290_v49 = vadd.f32 %v2521_v37, %v1275_v17  ;;  %v1321_v37 = vand.u32 2147483647, %v1289_v53  ;;  %v1299_v3 = vrot.slane %v1293_v62, 4 }
 0x18b   : > { %1084 = vrot.lane.b32.xlu0 %v2462_v40, %s1683_s12  ;;  %796 = vrot.lane.b32.xlu1 %v2428_v11, %s1688_s15 }
 0x18c   : > { %v1322_v23 = vand.u32 2147483647, %v1290_v49 }
 0x18d   : > { %v566_v38 = vpop.permute.xlu0 %565  ;;  %v584_v35 = vpop.permute.xlu1 %583 }
 0x18e   : > { %v571_v14 = vadd.f32 %v566_v38, %v2445_v29  ;;  %v588_v58 = vadd.f32 %v584_v35, %v580_v36  ;;  %v1328_v35 = vrot.slane %v1322_v23, 6 }
 0x18f   : > { %476 = vrot.lane.b32.xlu0 %v2200_v15, %s1690_s26  ;;  %963 = vrot.lane.b32.xlu1 %v2451_v42, %s1688_s15 }
 0x191   : > { %v574_v30 = vpop.permute.xlu0 %573  ;;  %v592_v10 = vpop.permute.xlu1 %591 }
 0x192   : > { %v579_v34 = vadd.f32 %v574_v30, %v571_v14  ;;  %v596_v27 = vadd.f32 %v592_v10, %v588_v58  ;;  %v1327_v58 = vrot.slane %v1321_v37, 6 }
 0x193   : > { %639 = vrot.lane.b32.xlu0 %v2252_v22, %s1690_s26  ;;  %1090 = vrot.lane.b32.xlu1 %v2477_v43, %s1684_s14 }
 0x195   : > { %v582_v8 = vpop.permute.xlu0 %581  ;;  %v600_v15 = vpop.permute.xlu1 %599 }
 0x196   : > { %v587_v25 = vadd.f32 %v582_v8, %v579_v34  ;;  %v604_v29 = vadd.f32 %v600_v15, %v596_v27  ;;  %v1323_v15 = vand.u32 2147483647, %v1291_v54 }
 0x197   : > { %798 = vrot.lane.b32.xlu0 %v2323_v55, %s1688_s15  ;;  %804 = vrot.lane.b32.xlu1 %v2428_v11, %s1690_s26 }
 0x199   : > { %v590_v51 = vpop.permute.xlu0 %589  ;;  %v608_v22 = vpop.permute.xlu1 %607 }
 0x19a   : > { %v595_v46 = vadd.f32 %v590_v51, %v587_v25  ;;  %v612_v2 = vadd.f32 %v608_v22, %v604_v29  ;;  %v1329_v25 = vsel %vm367_vm7, %v1327_v58, %v1328_v35 }
 0x19b   : > { %965 = vrot.lane.b32.xlu0 %v2387_v48, %s1688_s15  ;;  %971 = vrot.lane.b32.xlu1 %v2451_v42, %s1690_s26 }
 0x19d   : > { %v598_v16 = vpop.permute.xlu0 %597  ;;  %v616_v61 = vpop.permute.xlu1 %615 }
 0x19e   : > { %v603_v57 = vadd.f32 %v598_v16, %v595_v46  ;;  %v620_v7 = vadd.f32 %v616_v61, %v612_v2  ;;  %v1330_v2 = vrot.slane %v1323_v15, 6 }
 0x19f   : > { %1092 = vrot.lane.b32.xlu0 %v2462_v40, %s1684_s14  ;;  %1098 = vrot.lane.b32.xlu1 %v2477_v43, %s1685_s30 }
 0x1a1   : > { %v606_v33 = vpop.permute.xlu0 %605  ;;  %v624_v39 = vpop.permute.xlu1 %623 }
 0x1a2   : > { %v611_v32 = vadd.f32 %v606_v33, %v603_v57  ;;  %v2625_v9 = vadd.f32 %v624_v39, %v620_v7 }
 0x1a3   : > { %806 = vrot.lane.b32.xlu0 %v2323_v55, %s1690_s26  ;;  %1106 = vrot.lane.b32.xlu1 %v2477_v43, %s1686_s27 }
 0x1a5   : > { %v614_v20 = vpop.permute.xlu0 %613  ;;  %v630_v47 = vpop.permute.xlu1 %629 }
 0x1a6   : > { %v619_v31 = vadd.f32 %v614_v20, %v611_v32  ;;  %v1331_v32 = vsel %vm367_vm7, %v1328_v35, %v1330_v2 }
 0x1a7   : > { %973 = vrot.lane.b32.xlu0 %v2387_v48, %s1690_s26  ;;  %1114 = vrot.lane.b32.xlu1 %v2477_v43, %s1687_s8 }
 0x1a9   : > { %v622_v60 = vpop.permute.xlu0 %621  ;;  %v735_v12 = vpop.permute.xlu1 %734 }
 0x1aa   : > { %v627_v13 = vadd.f32 %v622_v60, %v619_v31  ;;  %v739_v28 = vadd.f32 %v735_v12, %v2323_v55  ;;  %v1258_v55 = vsub.f32 %v2036_v59, %v2543_v41 }
 0x1ab   : > { %1100 = vrot.lane.b32.xlu0 %v2462_v40, %s1685_s30  ;;  %1122 = vrot.lane.b32.xlu1 %v2477_v43, %s1689_s21 }
 0x1ac   : > { %v2643_v5 = vadd.f32 %v630_v47, %v627_v13  ;;  %v1294_v52 = vand.u32 2147483647, %v1258_v55 }
 0x1ad   : > { %v469_v24 = vpop.permute.xlu0 %468  ;;  %v902_v26 = vpop.permute.xlu1 %901 }
 0x1ae   : > { %v2647_v4 = vadd.f32 %v469_v24, %v465_v45  ;;  %v1298_v45 = vrot.slane %v1292_v18, 4  ;;  %v906_v38 = vadd.f32 %v902_v26, %v2387_v48  ;;  %v1301_v51 = vrot.slane %v1294_v52, 4 }
 0x1af   : > { %1108 = vrot.lane.b32.xlu0 %v2462_v40, %s1686_s27  ;;  %1130 = vrot.lane.b32.xlu1 %v2477_v43, %s1688_s15 }
 0x1b0   : > { %v1300_v10 = vsel %vm347_vm5, %v1298_v45, %v1299_v3  ;;  %v1302_v57 = vsel %vm347_vm5, %v1299_v3, %v1301_v51 }
 0x1b1   : > { %v733_v6 = vpop.permute.xlu0 %732  ;;  %v743_v44 = vpop.permute.xlu1 %742 }
 0x1b2   : > { %v747_v0 = vadd.f32 %v743_v44, %v739_v28  ;;  %v738_v30 = vadd.f32 %v733_v6, %v2428_v11 }
 0x1b3   : > { %1116 = vrot.lane.b32.xlu0 %v2462_v40, %s1687_s8  ;;  %1138 = vrot.lane.b32.xlu1 %v2477_v43, %s1690_s26 }
 0x1b5   : > { %v900_v36 = vpop.permute.xlu0 %899  ;;  %v910_v14 = vpop.permute.xlu1 %909 }
 0x1b6   : > { %v914_v34 = vadd.f32 %v910_v14, %v906_v38  ;;  %v905_v41 = vadd.f32 %v900_v36, %v2451_v42 }
 0x1b7   : > { %1124 = vrot.lane.b32.xlu0 %v2462_v40, %s1689_s21  ;;  %1303 = vrot.lane.b32.xlu1 %v1300_v10, %s1686_s27 }
 0x1b9   : > { %v741_v27 = vpop.permute.xlu0 %740  ;;  %v751_v59 = vpop.permute.xlu1 %750 }
 0x1ba   : > { %v746_v48 = vadd.f32 %v741_v27, %v738_v30  ;;  %v755_v8 = vadd.f32 %v751_v59, %v747_v0 }
 0x1bb   : > { %1132 = vrot.lane.b32.xlu0 %v2462_v40, %s1688_s15  ;;  %1332 = vrot.lane.b32.xlu1 %v1329_v25, %s1684_s14 }
 0x1bd   : > { %v908_v11 = vpop.permute.xlu0 %907  ;;  %v918_v1 = vpop.permute.xlu1 %917 }
 0x1be   : > { %v913_v29 = vadd.f32 %v908_v11, %v905_v41  ;;  %v922_v46 = vadd.f32 %v918_v1, %v914_v34 }
 0x1bf   : > { %1140 = vrot.lane.b32.xlu0 %v2462_v40, %s1690_s26 }
 0x1c1   : > { %v749_v22 = vpop.permute.xlu0 %748  ;;  %v759_v42 = vpop.permute.xlu1 %758 }
 0x1c2   : > { %v754_v16 = vadd.f32 %v749_v22, %v746_v48  ;;  %v763_v61 = vadd.f32 %v759_v42, %v755_v8 }
 0x1c3   : > { %1305 = vrot.lane.b32.xlu0 %v1302_v57, %s1686_s27 }
 0x1c5   : > { %v916_v7 = vpop.permute.xlu0 %915  ;;  %v926_v39 = vpop.permute.xlu1 %925 }
 0x1c6   : > { %v921_v33 = vadd.f32 %v916_v7, %v913_v29  ;;  %v930_v20 = vadd.f32 %v926_v39, %v922_v46 }
 0x1c7   : > { %1334 = vrot.lane.b32.xlu0 %v1331_v32, %s1684_s14 }
 0x1c9   : > { %v757_v31 = vpop.permute.xlu0 %756  ;;  %v767_v60 = vpop.permute.xlu1 %766 }
 0x1ca   : > { %v762_v47 = vadd.f32 %v757_v31, %v754_v16  ;;  %v771_v13 = vadd.f32 %v767_v60, %v763_v61 }
 0x1cd   : > { %v924_v17 = vpop.permute.xlu0 %923  ;;  %v934_v63 = vpop.permute.xlu1 %933 }
 0x1ce   : > { %v929_v12 = vadd.f32 %v924_v17, %v921_v33  ;;  %v2682_v56 = vadd.f32 %v934_v63, %v930_v20 }
 0x1d1   : > { %v765_v19 = vpop.permute.xlu0 %764  ;;  %v775_v49 = vpop.permute.xlu1 %774 }
 0x1d2   : > { %v770_v24 = vadd.f32 %v765_v19, %v762_v47  ;;  %v2684_v26 = vadd.f32 %v775_v49, %v771_v13 }
 0x1d5   : > { %v932_v53 = vpop.permute.xlu0 %931  ;;  %v2686_v18 = vpop.permute.xlu1 %941 }
 0x1d6   : > { %v937_v62 = vadd.f32 %v932_v53, %v929_v12 }
 0x1d9   : > { %v773_v6 = vpop.permute.xlu0 %772  ;;  %v2688_v23 = vpop.permute.xlu1 %1068 }
 0x1da   : > { %v778_v28 = vadd.f32 %v773_v6, %v770_v24 }
 0x1dd   : > { %v940_v44 = vpop.permute.xlu0 %939  ;;  %v783_v3 = vpop.permute.xlu1 %782 }
 0x1de   : > { %v945_v37 = vadd.f32 %v940_v44, %v937_v62  ;;  %v787_v6 = vadd.f32 %v783_v3, %v2684_v26 }
 0x1e1   : > { %v2690_v45 = vpop.permute.xlu0 %1066  ;;  %v950_v0 = vpop.permute.xlu1 %949 }
 0x1e5   : > { %v781_v36 = vpop.permute.xlu0 %780  ;;  %v2692_v50 = vpop.permute.xlu1 %1076 }
 0x1e9   : > { %v948_v38 = vpop.permute.xlu0 %947  ;;  %v789_v35 = vpop.permute.xlu1 %788 }
 0x1ea   : > { %v953_v20 = vadd.f32 %v948_v38, %v945_v37 }
 0x1ed   : > { %v2694_v55 = vpop.permute.xlu0 %1074  ;;  %v956_v14 = vpop.permute.xlu1 %955 }
 0x1ee   : > { %v961_v63 = vadd.f32 %v956_v14, %v953_v20 }
 0x1f1   : > { %v632_v58 = vpop.permute.xlu0 %631  ;;  %v2696_v30 = vpop.permute.xlu1 %1082 }
 0x1f2   : > { %v636_v16 = vadd.f32 %v632_v58, %v2625_v9 }
 0x1f5   : > { %v791_v34 = vpop.permute.xlu0 %790  ;;  %v475_v10 = vpop.permute.xlu1 %474 }
 0x1f6   : > { %v480_v27 = vadd.f32 %v475_v10, %v2593_v21  ;;  %v795_v38 = vadd.f32 %v791_v34, %v787_v6 }
 0x1f8   : > { %v482_v48 = vmul.f32 0.008264462, %v480_v27 }
 0x1f9   : > { %v958_v54 = vpop.permute.xlu0 %957  ;;  %v638_v59 = vpop.permute.xlu1 %637 }
 0x1fa   : > { %v643_v52 = vadd.f32 %v638_v59, %v2643_v5  ;;  %v1160_v8 = vmul.f32 2.0, %v482_v48  ;;  %v1148_v29 = vmul.f32 %v482_v48, %v482_v48  ;;  %v786_v5 = vadd.f32 %v781_v36, %v778_v28 }
 0x1fb   : > { %v946_v36 = vadd.f32 %v2686_v18, %v2682_v56 }
 0x1fc   : > { %v645_v25 = vmul.f32 0.008264462, %v643_v52  ;;  %v794_v7 = vadd.f32 %v789_v35, %v786_v5 }
 0x1fd   : > { %v2700_v41 = vpop.permute.xlu0 %1084  ;;  %v797_v11 = vpop.permute.xlu1 %796  ;;  %v954_v10 = vadd.f32 %v950_v0, %v946_v36 }
 0x1fe   : > { %v2702_v15 = vmul.f32 %v1160_v8, %v645_v25  ;;  %v1152_v1 = vmul.f32 %v645_v25, %v645_v25  ;;  %v2704_v51 = vmul.f32 %v645_v25, %v482_v48  ;;  %v802_v31 = vadd.f32 %v797_v11, %v794_v7 }
 0x1ff   : > { %v1072_v48 = vadd.f32 %v2690_v45, %v2477_v43  ;;  %v962_v52 = vadd.f32 %v958_v54, %v954_v10 }
 0x200   : > { %v1172_v21 = vadd.f32 %v1152_v1, %v1148_v29 }
 0x201   : > { %v477_v46 = vpop.permute.xlu0 %476  ;;  %v964_v2 = vpop.permute.xlu1 %963  ;;  %v1080_v26 = vadd.f32 %v2694_v55, %v1072_v48  ;;  %v1073_v55 = vadd.f32 %v2688_v23, %v2462_v40 }
 0x202   : > { %v481_v22 = vadd.f32 %v477_v46, %v2647_v4  ;;  %v969_v49 = vadd.f32 %v964_v2, %v961_v63 }
 0x203   : > { %v1088_v34 = vadd.f32 %v2696_v30, %v1080_v26  ;;  %v1081_v7 = vadd.f32 %v2692_v50, %v1073_v55 }
 0x204   : > { %v483_v57 = vmul.f32 0.008264462, %v481_v22 }
 0x205   : > { %v640_v42 = vpop.permute.xlu0 %639  ;;  %v1091_v33 = vpop.permute.xlu1 %1090 }
 0x206   : > { %v644_v61 = vadd.f32 %v640_v42, %v636_v16  ;;  %v1161_v32 = vmul.f32 2.0, %v483_v57  ;;  %v1149_v13 = vmul.f32 %v483_v57, %v483_v57  ;;  %v1096_v16 = vadd.f32 %v1091_v33, %v1088_v34 }
 0x208   : > { %v646_v39 = vmul.f32 0.008264462, %v644_v61 }
 0x209   : > { %v799_v47 = vpop.permute.xlu0 %798  ;;  %v805_v12 = vpop.permute.xlu1 %804 }
 0x20a   : > { %v2708_v60 = vmul.f32 %v1161_v32, %v646_v39  ;;  %v1153_v17 = vmul.f32 %v646_v39, %v646_v39  ;;  %v2710_v4 = vmul.f32 %v646_v39, %v483_v57  ;;  %v810_v9 = vadd.f32 %v805_v12, %v802_v31 }
 0x20b   : > { %v803_v27 = vadd.f32 %v799_v47, %v795_v38  ;;  %v1089_v31 = vadd.f32 %v2700_v41, %v1081_v7  ;;  %v1164_v41 = vadd.f32 0.0001, %v2702_v15 }
 0x20c   : > { %v1173_v19 = vadd.f32 %v1153_v17, %v1149_v13  ;;  %v812_v53 = vmul.f32 0.008264462, %v810_v9  ;;  %v1165_v26 = vadd.f32 0.0001, %v2708_v60 }
 0x20d   : > { %v966_v24 = vpop.permute.xlu0 %965  ;;  %v972_v62 = vpop.permute.xlu1 %971 }
 0x20e   : > { %v1150_v28 = vsub.f32 %v812_v53, %v1148_v29  ;;  %v977_v44 = vadd.f32 %v972_v62, %v969_v49  ;;  %v970_v11 = vadd.f32 %v966_v24, %v962_v52  ;;  %v1174_v29 = vadd.f32 0.0001, %v1172_v21 }
 0x20f   : > { %v1175_v32 = vadd.f32 0.0001, %v1173_v19 }
 0x210   : > { %v979_v35 = vmul.f32 0.008264462, %v977_v44 }
 0x211   : > { %v1093_v37 = vpop.permute.xlu0 %1092  ;;  %v1099_v58 = vpop.permute.xlu1 %1098 }
 0x212   : > { %v1154_v14 = vsub.f32 %v979_v35, %v1152_v1  ;;  %v1104_v54 = vadd.f32 %v1099_v58, %v1096_v16  ;;  %v1097_v12 = vadd.f32 %v1093_v37, %v1089_v31 }
 0x214   : > { %v1176_v8 = vadd.f32 %v1154_v14, %v1150_v28 }
 0x215   : > { %v807_v59 = vpop.permute.xlu0 %806  ;;  %v1107_v3 = vpop.permute.xlu1 %1106 }
 0x216   : > { %v811_v25 = vadd.f32 %v807_v59, %v803_v27  ;;  %v1178_v46 = vadd.f32 0.0009, %v1176_v8  ;;  %v1112_v42 = vadd.f32 %v1107_v3, %v1104_v54 }
 0x218   : > { %v813_v56 = vmul.f32 0.008264462, %v811_v25  ;;  %v1180_v0 = vmul.f32 %v1178_v46, %v1174_v29 }
 0x219   : > { %v974_v18 = vpop.permute.xlu0 %973  ;;  %v1115_v2 = vpop.permute.xlu1 %1114 }
 0x21a   : > { %v1151_v22 = vsub.f32 %v813_v56, %v1149_v13  ;;  %v978_v1 = vadd.f32 %v974_v18, %v970_v11  ;;  %v1120_v39 = vadd.f32 %v1115_v2, %v1112_v42  ;;  %1570 = vrcp.f32 %v1180_v0 }
 0x21c   : > { %v980_v43 = vmul.f32 0.008264462, %v978_v1 }
 0x21d   : > { %v1101_v45 = vpop.permute.xlu0 %1100  ;;  %v1123_v5 = vpop.permute.xlu1 %1122 }
 0x21e   : > { %v1155_v57 = vsub.f32 %v980_v43, %v1153_v17  ;;  %v1128_v47 = vadd.f32 %v1123_v5, %v1120_v39  ;;  %v1105_v9 = vadd.f32 %v1101_v45, %v1097_v12 }
 0x220   : > { %v1177_v21 = vadd.f32 %v1155_v57, %v1151_v22 }
 0x221   : > { %v1109_v61 = vpop.permute.xlu0 %1108  ;;  %v1131_v20 = vpop.permute.xlu1 %1130 }
 0x222   : > { %v1179_v30 = vadd.f32 0.0009, %v1177_v21  ;;  %v1136_v17 = vadd.f32 %v1131_v20, %v1128_v47  ;;  %v1113_v23 = vadd.f32 %v1109_v61, %v1105_v9 }
 0x224   : > { %v1181_v33 = vmul.f32 %v1179_v30, %v1175_v32  ;;  %v1571_v58 = vpop.eup %1570 }
 0x225   : > { %v1117_v13 = vpop.permute.xlu0 %1116  ;;  %v1139_v63 = vpop.permute.xlu1 %1138 }
 0x226   : > { %v1144_v24 = vadd.f32 %v1139_v63, %v1136_v17  ;;  %v1121_v53 = vadd.f32 %v1117_v13, %v1113_v23  ;;  %1572 = vrcp.f32 %v1181_v33 }
 0x228   : > { %v1146_v49 = vmul.f32 0.008264462, %v1144_v24 }
 0x229   : > { %v1125_v40 = vpop.permute.xlu0 %1124  ;;  %v1304_v36 = vpop.permute.xlu1 %1303 }
 0x22a   : > { %v1158_v50 = vsub.f32 %v1146_v49, %v2704_v51  ;;  %v1129_v6 = vadd.f32 %v1125_v40, %v1121_v53  ;;  %v1309_v48 = vsel %vm1186_vm10, %v1304_v36, 0.0 }
 0x22c   : > { %v1166_v62 = vmul.f32 2.0, %v1158_v50 }
 0x22d   : > { %v1133_v19 = vpop.permute.xlu0 %1132  ;;  %v1333_v52 = vpop.permute.xlu1 %1332 }
 0x22e   : > { %v1168_v28 = vadd.f32 0.0009, %v1166_v62  ;;  %v1137_v44 = vadd.f32 %v1133_v19, %v1129_v6  ;;  %v1338_v3 = vsel %vm1186_vm10, %v1333_v52, 0.0 }
 0x230   : > { %v1170_v38 = vmul.f32 %v1168_v28, %v1164_v41  ;;  %v1573_v18 = vpop.eup %1572 }
 0x231   : > { %v1141_v37 = vpop.permute.xlu0 %1140 }
 0x232   : > { %v1145_v35 = vadd.f32 %v1141_v37, %v1137_v44  ;;  %v1183_v27 = vmul.f32 %v1571_v58, %v1170_v38 }
 0x234   : > { %v1147_v10 = vmul.f32 0.008264462, %v1145_v35 }
 0x235   : > { %v1306_v14 = vpop.permute.xlu0 %1305 }
 0x236   : > { %v1159_v51 = vsub.f32 %v1147_v10, %v2710_v4  ;;  %v1310_v59 = vsel %vm1186_vm10, %v1306_v14, 0.0  ;;  %v1187_v4 = vsel %vm1186_vm10, %v1183_v27, 0.0 }
 0x237   : > { %v1311_v15 = vadd.f32 %v1310_v59, %v1309_v48 }
 0x238   : > { %v1167_v8 = vmul.f32 2.0, %v1159_v51 }
 0x239   : > { %1312 = vadd.xlane.f32.xlu0 %v1311_v15  ;;  %v1335_v25 = vpop.permute.xlu0 %1334 }
 0x23a   : > { %v1169_v11 = vadd.f32 0.0009, %v1167_v8  ;;  %v1339_v29 = vsel %vm1186_vm10, %v1335_v25, 0.0 }
 0x23b   : > { %v1340_v46 = vadd.f32 %v1339_v29, %v1338_v3 }
 0x23c   : > { %v1171_v56 = vmul.f32 %v1169_v11, %v1165_v26 }
 0x23d   : > { %1341 = vadd.xlane.f32.xlu0 %v1340_v46 }
 0x23e   : > { %v1185_v34 = vmul.f32 %v1573_v18, %v1171_v56 }
 0x240   : > { %v1188_v0 = vsel %vm1186_vm10, %v1185_v34, 0.0 }
 0x241   : > { %v1189_v22 = vadd.f32 %v1188_v0, %v1187_v4 }
 0x243   : > { %1190 = vadd.xlane.f32.xlu1 %v1189_v22 }
 0x2c6   : > { %v1313_v1 = vpop.xlane.xlu0 %1312 }
 0x2c7   : > { %v1314_v2 = vrot.slane %v1313_v1, 4 }
 0x2c9   : > { %v1315_v43 = vadd.f32 %v1314_v2, %v1313_v1 }
 0x2ca   : > { %v1342_v16 = vpop.xlane.xlu0 %1341 }
 0x2cb   : > { %v1343_v60 = vrot.slane %v1342_v16, 4  ;;  %v1316_v54 = vrot.slane %v1315_v43, 2 }
 0x2cd   : > { %v1344_v45 = vadd.f32 %v1343_v60, %v1342_v16  ;;  %v1317_v21 = vadd.f32 %v1316_v54, %v1315_v43 }
 0x2cf   : > { %v1345_v5 = vrot.slane %v1344_v45, 2  ;;  %v1318_v30 = vrot.slane %v1317_v21, 1 }
 0x2d0   : > { %v1191_v57 = vpop.xlane.xlu1 %1190 }
 0x2d1   : > { %v1192_v55 = vrot.slane %v1191_v57, 4  ;;  %v1346_v61 = vadd.f32 %v1345_v5, %v1344_v45  ;;  %v1319_v33 = vadd.f32 %v1318_v30, %v1317_v21 }
 0x2d3   : > { %v1193_v42 = vadd.f32 %v1192_v55, %v1191_v57  ;;  %v1347_v20 = vrot.slane %v1346_v61, 1 }
 0x2d5   : > { %v1194_v7 = vrot.slane %v1193_v42, 2  ;;  %v1348_v47 = vadd.f32 %v1347_v20, %v1346_v61 }
 0x2d7   : > { %v1195_v32 = vadd.f32 %v1194_v7, %v1193_v42 }
 0x2d9   : > { %v1196_v39 = vrot.slane %v1195_v32, 1 }
 0x2db   : > { %v1197_v31 = vadd.f32 %v1196_v39, %v1195_v32 }
 0x2dd   : > { %1505 = vpush %v1197_v31 }
 0x2de   : > { %1507 = vpush %v1319_v33 }
 0x2df   : > { %1509 = vpush %v1348_v47 }
 0x30e   : > { %s1506_s10 = spop %1505 }
 0x30f   : > { %v1350_v13 = vstv %s1506_s10  ;;  %s1508_s7 = spop %1507 }
 0x310   : > { %1352 = vst.msk [vmem:[%s264_s9] sm:$0x1] %vm1351_vm11, %v1350_v13  ;;  %v1353_v12 = vstv %s1508_s7  ;;  %s1510_s5 = spop %1509 }
 0x311   : > { %1354 = vst.msk [vmem:[%s267_s18] sm:$0x1] %vm1351_vm11, %v1353_v12  ;;  %v1355_v17 = vstv %s1510_s5 }
 0x312   : > { %1356 = vst.msk [vmem:[%s270_s24] sm:$0x1] %vm1351_vm11, %v1355_v17 }
 0x313 PF: > { %p18_p11 = scmp.ge.s32.totalorder %s1738_s20, 4   ;;  %s2801_s15 = smov %s1664_s16 }
 0x314   : > { %s2802_s16 = smov %s1668_s17  ;;  %s2803_s17 = smov %s1748_s23 }
 0x315   : > { %s2804_s18 = smov %s1738_s20  ;;  %20 = sbr.rel (!%p18_p11) target bundleno = 5 (0x5), region = 105 }
 0x31c   :  { %1398 = vsyncpa [#allocation5], 1 }
 0x31d   :  { %1400 = vsyncpa [#allocation5 + $0x1], 1 }
 0x31e   :  { %1401 = vsyncpa [#allocation7], 1 }
 0x31f   :  { %1403 = vsyncpa [#allocation7 + $0x1], 1 }

</bundles_post_ra>
